<compile_context>
chip_gen: v5e
topology: v5e:2x2
jax: 0.10.0
libtpu: 0.0.40
codegen_flags: <defaults>
</compile_context>

<pallas_src>
import functools

import jax
import jax.numpy as jnp
from jax.experimental import pallas as pl
from jax.experimental.pallas import tpu as pltpu

FEAT_DIM = 1280      # MobileNetV2 feature width expected by the classifier heads
HIDDEN = 100         # true hidden width of both classifier heads (PyTorch spec)
HIDDEN_PAD = 128     # lane-dense padded hidden width
OUT_PAD = 128        # lane-dense padded output width (class logits | domain logits | 0s)
N_CHUNK = 256        # FEAT_DIM chunk width for the stem matmul
N_CHUNKS = FEAT_DIM // N_CHUNK


# --------------------------------------------------------------------------
# Sizing helpers (generation aware)
# --------------------------------------------------------------------------
def _round_up(x, m):
    return ((x + m - 1) // m) * m


def _vmem_capacity_bytes():
    try:
        return int(pltpu.get_tpu_info().vmem_capacity_bytes)
    except Exception:
        return 64 * 1024 * 1024      # v7x-safe fallback (smallest VMEM)


def _pick_hw_tile(hw, c_in, x_itemsize):
    """Multiple-of-128 spatial tile, capped at 1024 (DMA already amortized there)
    and by a conservative per-row VMEM budget."""
    tile = min(1024, _round_up(hw, 128))
    # per spatial row: double-buffered input + bf16 cast copy + one live f32 act chunk
    per_row = 2 * c_in * x_itemsize + c_in * 2 + 2 * N_CHUNK * 4
    budget = max(4 << 20, _vmem_capacity_bytes() // 8)
    while tile > 128 and tile * per_row > budget:
        tile -= 128
    return tile


def _stem_vmem_limit(cap, c_in, hw_tile, x_itemsize, fuse):
    """vmem_limit_bytes computed from the actual buffers (+ headroom)."""
    need = 2 * c_in * hw_tile * x_itemsize          # double-buffered input tile
    need += c_in * hw_tile * 2                      # bf16 cast copy of the tile
    need += 2 * hw_tile * N_CHUNK * 4               # one live act chunk (+ slack)
    need += 2 * FEAT_DIM * (c_in * 2 + 4 + 4)       # w / b / feat-out (x2 buffers)
    need += N_CHUNKS * 8 * N_CHUNK * 4              # pooled-sum accumulator scratch
    if fuse:
        need += 2 * (FEAT_DIM * 2 * HIDDEN_PAD * 2      # w1 bf16
                     + 2 * HIDDEN_PAD * OUT_PAD * 2     # w2 bf16
                     + (2 * HIDDEN_PAD + 2 * OUT_PAD) * 4)
    limit = max(need + (8 << 20), 32 << 20)
    return int(min(limit, cap * 3 // 4))


# --------------------------------------------------------------------------
# Kernel 1: feature-extractor stem, tiled over the spatial axis.
#   Optionally fuses both (non-attention) classifier heads into the finalize.
# --------------------------------------------------------------------------
def _stem_kernel(x_ref, w_ref, b_ref, *rest,
                 fuse_heads, inv_hw, n_pad, hw_tile):
    if fuse_heads:
        w1_ref, b1_ref, w2_ref, b2_ref, feat_ref, out_ref, acc_ref = rest
    else:
        feat_ref, acc_ref = rest
        w1_ref = b1_ref = w2_ref = b2_ref = out_ref = None

    h = pl.program_id(1)

    @pl.when(h == 0)
    def _init():
        acc_ref[...] = jnp.zeros_like(acc_ref)

    x = x_ref[0].astype(jnp.bfloat16)                # (C, hw_tile)  bf16

    def chunk_body(n, carry):
        # pointwise conv == channel contraction (lhs-transposed MXU matmul), f32 acc
        act = jax.lax.dot_general(
            x, w_ref[n], dimension_numbers=(((0,), (0,)), ((), ())),
            preferred_element_type=jnp.float32)                 # (hw_tile, N_CHUNK)
        act = jnp.clip(act + b_ref[n], 0.0, 6.0)                # bias + ReLU6
        # partial pool: 8-row partial sums (pure vreg-to-vreg VPU adds, no XLU)
        part = jnp.sum(act.reshape(hw_tile // 8, 8, N_CHUNK), axis=0)   # (8, N_CHUNK)
        acc_ref[n] = acc_ref[n] + part
        return carry

    # chunked FEAT_DIM loop: only one (hw_tile, N_CHUNK) f32 intermediate is live
    jax.lax.fori_loop(0, N_CHUNKS, chunk_body, 0)

    @pl.when(h == pl.num_programs(1) - 1)
    def _finalize():
        pooled = jnp.sum(acc_ref[...], axis=1)          # (N_CHUNKS, N_CHUNK), 8->1 reduce
        if n_pad:
            # zero-padded spatial positions each contributed exactly clip(b, 0, 6);
            # subtract their contribution so the average is over the true HW only.
            pooled = pooled - float(n_pad) * jnp.clip(b_ref[:, 0, :], 0.0, 6.0)
        feat = pooled * inv_hw
        feat_ref[0] = feat

        if fuse_heads:
            # fused class/domain heads (attention=False path):
            #   relu -> Linear(1280, 100|100) -> relu -> block-diag Linear -> logits
            f = jnp.maximum(feat, 0.0).astype(jnp.bfloat16)       # (N_CHUNKS, N_CHUNK)
            hsum = b1_ref[...]                                    # (1, 256) f32
            for n in range(N_CHUNKS):                             # K-chunked first layer
                hsum = hsum + jnp.dot(f[n:n + 1, :], w1_ref[n],
                                      preferred_element_type=jnp.float32)
            hh = jnp.maximum(hsum, 0.0).astype(jnp.bfloat16)      # (1, 256)
            out_ref[0] = (jnp.dot(hh, w2_ref[...], preferred_element_type=jnp.float32)
                          + b2_ref[...])


def run_stem(x_nchw, w_feat, b_feat, head_pack=None):
    """Stem: pointwise conv (bf16 MXU) + ReLU6 + global-avg-pool, tiled over HW.

    If head_pack is given (attention=False), the classifier heads are fused into
    the finalize step and a (B, OUT_PAD) logits slab is returned as well."""
    B, C, H, W = x_nchw.shape
    HW = H * W
    itemsize = jnp.dtype(x_nchw.dtype).itemsize
    hw_tile = _pick_hw_tile(HW, C, itemsize)
    hw_pad = _round_up(HW, hw_tile)
    n_hw = hw_pad // hw_tile
    n_pad = hw_pad - HW
    fuse = head_pack is not None

    x = x_nchw.reshape(B, C, HW)            # free reshape; image stays NCHW in HBM
    if n_pad:
        x = jnp.pad(x, ((0, 0), (0, 0), (0, n_pad)))

    # chunk-major layouts: every in-kernel dynamic index is on the leading axis
    w = (w_feat.astype(jnp.bfloat16)
         .reshape(C, N_CHUNKS, N_CHUNK).transpose(1, 0, 2))      # (n_chunks, C, 256)
    b = b_feat.reshape(N_CHUNKS, 1, N_CHUNK)                     # (n_chunks, 1, 256)

    in_specs = [
        pl.BlockSpec((1, C, hw_tile), lambda bb, hh: (bb, 0, hh)),
        pl.BlockSpec((N_CHUNKS, C, N_CHUNK), lambda bb, hh: (0, 0, 0)),
        pl.BlockSpec((N_CHUNKS, 1, N_CHUNK), lambda bb, hh: (0, 0, 0)),
    ]
    args = [x, w, b]
    out_shape = [jax.ShapeDtypeStruct((B, N_CHUNKS, N_CHUNK), jnp.float32)]
    out_specs = [pl.BlockSpec((1, N_CHUNKS, N_CHUNK), lambda bb, hh: (bb, 0, 0))]

    if fuse:
        w1 = head_pack["w1"].reshape(N_CHUNKS, N_CHUNK, 2 * HIDDEN_PAD)   # bf16
        args += [w1, head_pack["b1"], head_pack["w2"], head_pack["b2"]]
        in_specs += [
            pl.BlockSpec((N_CHUNKS, N_CHUNK, 2 * HIDDEN_PAD), lambda bb, hh: (0, 0, 0)),
            pl.BlockSpec((1, 2 * HIDDEN_PAD), lambda bb, hh: (0, 0)),
            pl.BlockSpec((2 * HIDDEN_PAD, OUT_PAD), lambda bb, hh: (0, 0)),
            pl.BlockSpec((1, OUT_PAD), lambda bb, hh: (0, 0)),
        ]
        out_shape.append(jax.ShapeDtypeStruct((B, 1, OUT_PAD), jnp.float32))
        out_specs.append(pl.BlockSpec((1, 1, OUT_PAD), lambda bb, hh: (bb, 0, 0)))

    cap = _vmem_capacity_bytes()
    vmem_limit = _stem_vmem_limit(cap, C, hw_tile, itemsize, fuse)

    # TODO(synk): if B == 1 is a real deployment shape on v7x, split the HW
    # reduction across the two TensorCores (two partial accumulators + combine)
    # instead of relying on the "parallel" B axis for megacore utilization.
    outs = pl.pallas_call(
        functools.partial(_stem_kernel, fuse_heads=fuse, inv_hw=1.0 / float(HW),
                          n_pad=n_pad, hw_tile=hw_tile),
        out_shape=tuple(out_shape) if fuse else out_shape[0],
        grid_spec=pltpu.PrefetchScalarGridSpec(
            num_scalar_prefetch=0,
            grid=(B, n_hw),
            in_specs=in_specs,
            out_specs=out_specs if fuse else out_specs[0],
            scratch_shapes=[pltpu.VMEM((N_CHUNKS, 8, N_CHUNK), jnp.float32)],
        ),
        compiler_params=pltpu.CompilerParams(
            dimension_semantics=("parallel", "arbitrary"),
            vmem_limit_bytes=vmem_limit,
        ),
    )(*args)

    if fuse:
        feats, out = outs
        return feats.reshape(B, FEAT_DIM), out.reshape(B, OUT_PAD)
    return outs.reshape(B, FEAT_DIM)


# --------------------------------------------------------------------------
# Kernel 2: lane-dense classifier heads with SelfAttention (attention=True path)
#   class : ReLU -> Linear(1280,100) -> ReLU -> SelfAttention -> ReLU -> Linear(100, nc)
#   domain: ReLU -> Linear(1280,100) -> ReLU -> Linear(100, 2)
#   (Dropout = identity at inference; GradientReversalFn = identity forward)
# --------------------------------------------------------------------------
def _heads_attn_kernel(f_ref, w1_ref, b1_ref, w2_ref, b2_ref,
                       wqkv_ref, bqkv_ref, out_ref, *, b_actual):
    f = jnp.maximum(f_ref[...], 0.0).astype(jnp.bfloat16)              # leading ReLU
    # fused first layers: (B_pad, 1280) @ (1280, 256) -> [hc | hd], bf16 weights
    h = jnp.dot(f, w1_ref[...], preferred_element_type=jnp.float32) + b1_ref[...]
    h = jnp.maximum(h, 0.0)
    hc = h[:, :HIDDEN_PAD]
    hd = h[:, HIDDEN_PAD:]

    # SelfAttention across the batch dimension (PyTorch module semantics for 2-D input)
    qkv = (jnp.dot(hc.astype(jnp.bfloat16), wqkv_ref[...],
                   preferred_element_type=jnp.float32) + bqkv_ref[...])
    q = qkv[:, :HIDDEN_PAD] * (1.0 / float(HIDDEN) ** 0.5)    # fold 1/sqrt(d) into q
    k = qkv[:, HIDDEN_PAD:2 * HIDDEN_PAD]
    v = qkv[:, 2 * HIDDEN_PAD:]
    scores = jax.lax.dot_general(q, k, (((1,), (1,)), ((), ())),
                                 preferred_element_type=jnp.float32)   # (B_pad, B_pad)
    if b_actual < scores.shape[-1]:
        # mask padded batch rows out of the softmax keys
        col = jax.lax.broadcasted_iota(jnp.int32, scores.shape, 1)
        scores = jnp.where(col < b_actual, scores, -1e30)
    scores = scores - jnp.max(scores, axis=-1, keepdims=True)
    p = jnp.exp(scores)
    w_att = p * pl.reciprocal(jnp.sum(p, axis=-1, keepdims=True), approx=True)
    hc = jnp.maximum(jnp.dot(w_att, v, preferred_element_type=jnp.float32), 0.0)

    # single block-diagonal (256, 128) matmul for both heads (one MXU push/pop)
    h2 = jnp.concatenate([hc, hd], axis=1).astype(jnp.bfloat16)
    out_ref[...] = (jnp.dot(h2, w2_ref[...], preferred_element_type=jnp.float32)
                    + b2_ref[...])


def run_heads_attention(features, packed, num_classes):
    B = features.shape[0]
    B_pad = _round_up(max(B, 16), 16)       # bf16 sublane packing -> multiple of 16
    f = features if B_pad == B else jnp.pad(features, ((0, B_pad - B), (0, 0)))

    vmem = pl.BlockSpec(memory_space=pltpu.MemorySpace.VMEM)
    args = [f, packed["w1"], packed["b1"], packed["w2"], packed["b2"],
            packed["wqkv"], packed["bqkv"]]
    out = pl.pallas_call(
        functools.partial(_heads_attn_kernel, b_actual=B),
        out_shape=jax.ShapeDtypeStruct((B_pad, OUT_PAD), jnp.float32),
        in_specs=[vmem] * len(args),
        out_specs=vmem,
    )(*args)
    return out[:B, :num_classes], out[:B, num_classes:num_classes + 2]


# --------------------------------------------------------------------------
# Parameter packing: zero-pad HIDDEN 100->128, fuse class/domain weights into
# lane-dense blocks, store weights in bf16 (halves the weight DMA).
# --------------------------------------------------------------------------
def pack_head_params(params, num_classes, attention):
    nc = num_classes
    assert nc + 2 <= OUT_PAD, "num_classes + 2 must fit in one 128-lane output slab"

    def pad_cols(a, n):
        return jnp.pad(a, ((0, 0), (0, n - a.shape[1])))

    def pad_rows(a, n):
        return jnp.pad(a, ((0, n - a.shape[0]), (0, 0)))

    packed = {
        "w1": jnp.concatenate([pad_cols(params["w1c"], HIDDEN_PAD),
                               pad_cols(params["w1d"], HIDDEN_PAD)],
                              axis=1).astype(jnp.bfloat16),            # (1280, 256)
        "b1": jnp.concatenate([pad_cols(params["b1c"], HIDDEN_PAD),
                               pad_cols(params["b1d"], HIDDEN_PAD)], axis=1),
    }

    w2c = pad_rows(params["w2c"], HIDDEN_PAD)                          # (128, nc)
    w2d = pad_rows(params["w2d"], HIDDEN_PAD)                          # (128, 2)
    top = jnp.concatenate(
        [w2c, jnp.zeros((HIDDEN_PAD, OUT_PAD - nc), jnp.float32)], axis=1)
    bot = jnp.concatenate(
        [jnp.zeros((HIDDEN_PAD, nc), jnp.float32), w2d,
         jnp.zeros((HIDDEN_PAD, OUT_PAD - nc - 2), jnp.float32)], axis=1)
    packed["w2"] = jnp.concatenate([top, bot], axis=0).astype(jnp.bfloat16)  # (256, 128)
    packed["b2"] = jnp.concatenate(
        [params["b2c"], params["b2d"],
         jnp.zeros((1, OUT_PAD - nc - 2), jnp.float32)], axis=1)

    if attention:
        def pad2(a):
            return jnp.pad(a, ((0, HIDDEN_PAD - a.shape[0]),
                               (0, HIDDEN_PAD - a.shape[1])))
        packed["wqkv"] = jnp.concatenate(
            [pad2(params["wq"]), pad2(params["wk"]), pad2(params["wv"])],
            axis=1).astype(jnp.bfloat16)                               # (128, 384)
        packed["bqkv"] = jnp.concatenate(
            [pad_cols(params["bq"], HIDDEN_PAD), pad_cols(params["bk"], HIDDEN_PAD),
             pad_cols(params["bv"], HIDDEN_PAD)], axis=1)
    return packed


def dann_bespoke_forward(x_nchw, params, num_classes, alpha=0.0, attention=False):
    # GradientReversalFn is the identity in the forward pass (alpha only scales grads)
    packed = pack_head_params(params, num_classes, attention)
    if attention:
        feats = run_stem(x_nchw, params["w_feat"], params["b_feat"])
        feats = feats.reshape(-1, feats.shape[-1])   # features.view(-1, size(1))
        class_out, domain_out = run_heads_attention(feats, packed, num_classes)
    else:
        feats, out = run_stem(x_nchw, params["w_feat"], params["b_feat"],
                              head_pack=packed)      # heads fused into the stem finalize
        class_out = out[:, :num_classes]
        domain_out = out[:, num_classes:num_classes + 2]
    return class_out, domain_out, feats


# --------------------------------------------------------------------------
# Deterministic parameter init (PyTorch nn.Linear-style uniform fan-in init)
# --------------------------------------------------------------------------
def init_params(key, c_in, num_classes):
    keys = jax.random.split(key, 8)

    def lin(k, fan_in, fan_out):
        scale = float(1.0 / (fan_in ** 0.5))
        kw, kb = jax.random.split(k)
        w = jax.random.uniform(kw, (fan_in, fan_out), jnp.float32, -scale, scale)
        b = jax.random.uniform(kb, (1, fan_out), jnp.float32, -scale, scale)
        return w, b

    p = {}
    p["w_feat"], p["b_feat"] = lin(keys[0], c_in, FEAT_DIM)
    p["w1c"], p["b1c"] = lin(keys[1], FEAT_DIM, HIDDEN)
    p["w2c"], p["b2c"] = lin(keys[2], HIDDEN, num_classes)
    p["wq"], p["bq"] = lin(keys[3], HIDDEN, HIDDEN)
    p["wk"], p["bk"] = lin(keys[4], HIDDEN, HIDDEN)
    p["wv"], p["bv"] = lin(keys[5], HIDDEN, HIDDEN)
    p["w1d"], p["b1d"] = lin(keys[6], FEAT_DIM, HIDDEN)
    p["w2d"], p["b2d"] = lin(keys[7], HIDDEN, 2)
    return p


# --------------------------------------------------------------------------
# Pure-JAX reference (mirrors the kernel's bf16 matmul rounding) for validation
# --------------------------------------------------------------------------
def _reference_forward(x_nchw, params, num_classes, attention):
    f32 = jnp.float32

    def bf(a):
        return a.astype(jnp.bfloat16).astype(f32)

    B, C, H, W = x_nchw.shape
    x = jnp.transpose(x_nchw, (0, 2, 3, 1)).reshape(B, H * W, C)
    act = jnp.einsum("bhc,cf->bhf", bf(x), bf(params["w_feat"])) + params["b_feat"][None]
    act = jnp.clip(act, 0.0, 6.0)
    feats = jnp.mean(act, axis=1)

    fb = bf(jnp.maximum(feats, 0.0))
    hc = jnp.maximum(fb @ bf(params["w1c"]) + params["b1c"], 0.0)
    hd = jnp.maximum(fb @ bf(params["w1d"]) + params["b1d"], 0.0)
    if attention:
        hcb = bf(hc)
        q = hcb @ bf(params["wq"]) + params["bq"]
        k = hcb @ bf(params["wk"]) + params["bk"]
        v = hcb @ bf(params["wv"]) + params["bv"]
        s = (q @ k.T) / jnp.sqrt(jnp.float32(HIDDEN))
        hc = jax.nn.softmax(s, axis=-1) @ v
    hc = jnp.maximum(hc, 0.0)
    class_out = bf(hc) @ bf(params["w2c"]) + params["b2c"]
    domain_out = bf(hd) @ bf(params["w2d"]) + params["b2d"]
    return class_out, domain_out, feats


if __name__ == "__main__":
    import numpy as np

    num_classes = 10
    test_cases = [
        ((2, 4, 16, 16), (False, True)),   # HW = 256, divides cleanly into 128-tiles
        ((2, 3, 13, 13), (False,)),        # HW = 169 -> exercises spatial zero-pad path
    ]
    for (B, C, H, W), attn_modes in test_cases:
        x_nchw = jax.random.normal(jax.random.PRNGKey(0), (B, C, H, W), dtype=jnp.float32)
        params = init_params(jax.random.PRNGKey(1), C, num_classes)

        for attention in attn_modes:
            class_out, domain_out, feats = dann_bespoke_forward(
                x_nchw, params, num_classes, alpha=0.0, attention=attention)
            jax.block_until_ready((class_out, domain_out, feats))

            assert class_out.shape == (B, num_classes)
            assert domain_out.shape == (B, 2)
            assert feats.shape == (B, FEAT_DIM)

            ref_c, ref_d, ref_f = _reference_forward(x_nchw, params, num_classes, attention)
            np.testing.assert_allclose(np.asarray(feats), np.asarray(ref_f),
                                       rtol=2e-2, atol=2e-2)
            np.testing.assert_allclose(np.asarray(class_out), np.asarray(ref_c),
                                       rtol=2e-2, atol=2e-2)
            np.testing.assert_allclose(np.asarray(domain_out), np.asarray(ref_d),
                                       rtol=2e-2, atol=2e-2)

    print("KERNEL_OK")
</pallas_src>

<mosaic_0001>
module attributes {stable_mosaic.version = 11 : i64} {
  func.func @_stem_kernel(%arg0: i32, %arg1: i32, %arg2: memref<1x4x256xf32, #tpu.memory_space<vmem>>, %arg3: memref<5x4x256xbf16, #tpu.memory_space<vmem>>, %arg4: memref<5x1x256xf32, #tpu.memory_space<vmem>>, %arg5: memref<5x256x256xbf16, #tpu.memory_space<vmem>>, %arg6: memref<1x256xf32, #tpu.memory_space<vmem>>, %arg7: memref<256x128xbf16, #tpu.memory_space<vmem>>, %arg8: memref<1x128xf32, #tpu.memory_space<vmem>>, %arg9: memref<1x5x256xf32, #tpu.memory_space<vmem>>, %arg10: memref<1x1x128xf32, #tpu.memory_space<vmem>>, %arg11: memref<5x8x256xf32, #tpu.memory_space<vmem>>) attributes {dimension_semantics = [#tpu.dimension_semantics<parallel>, #tpu.dimension_semantics<arbitrary>], iteration_bounds = array<i64: 2, 1>, scalar_prefetch = 0 : i64, scratch_operands = 1 : i64, tpu.core_type = #tpu.core_type<tc>, window_params = [{transform_indices = @transform_0, window_bounds = array<i64: 1, 4, 256>}, {pipeline_mode = #tpu.pipeline_mode<synchronous>, transform_indices = @transform_1, window_bounds = array<i64: 5, 4, 256>}, {pipeline_mode = #tpu.pipeline_mode<synchronous>, transform_indices = @transform_2, window_bounds = array<i64: 5, 1, 256>}, {pipeline_mode = #tpu.pipeline_mode<synchronous>, transform_indices = @transform_3, window_bounds = array<i64: 5, 256, 256>}, {pipeline_mode = #tpu.pipeline_mode<synchronous>, transform_indices = @transform_4, window_bounds = array<i64: 1, 256>}, {pipeline_mode = #tpu.pipeline_mode<synchronous>, transform_indices = @transform_5, window_bounds = array<i64: 256, 128>}, {pipeline_mode = #tpu.pipeline_mode<synchronous>, transform_indices = @transform_6, window_bounds = array<i64: 1, 128>}, {transform_indices = @transform_7, window_bounds = array<i64: 1, 5, 256>}, {transform_indices = @transform_8, window_bounds = array<i64: 1, 1, 128>}]} {
    %c0_i32 = arith.constant 0 : i32
    %0 = arith.cmpi eq, %arg1, %c0_i32 : i32
    %1 = arith.extui %0 : i1 to i32
    %c0_i32_0 = arith.constant 0 : i32
    %2 = arith.cmpi ne, %1, %c0_i32_0 : i32
    scf.if %2 {
      %cst = arith.constant 0.000000e+00 : f32
      %10 = vector.broadcast %cst : f32 to vector<5x8x256xf32>
      %c0_7 = arith.constant 0 : index
      %c0_8 = arith.constant 0 : index
      %c0_9 = arith.constant 0 : index
      %11 = vector.load %arg11[%c0_7, %c0_8, %c0_9] : memref<5x8x256xf32, #tpu.memory_space<vmem>>, vector<5x8x256xf32>
      tpu.vector_store %arg11[%c0_7, %c0_8, %c0_9], %10 {strides = array<i32>} : memref<5x8x256xf32, #tpu.memory_space<vmem>>, vector<5x8x256xf32>,
    } else {
    }
    %c0 = arith.constant 0 : index
    %c0_1 = arith.constant 0 : index
    %c0_2 = arith.constant 0 : index
    %3 = vector.load %arg2[%c0, %c0_1, %c0_2] : memref<1x4x256xf32, #tpu.memory_space<vmem>>, vector<1x4x256xf32>
    %4 = vector.shape_cast %3 : vector<1x4x256xf32> to vector<4x256xf32>
    %5 = arith.truncf %4 : vector<4x256xf32> to vector<4x256xbf16>
    %c0_i32_3 = arith.constant 0 : i32
    %c5_i32 = arith.constant 5 : i32
    %6 = arith.addi %c0_i32_3, %c5_i32 : i32
    %c1_i32 = arith.constant 1 : i32
    scf.for %arg12 = %c0_i32_3 to %6 step %c1_i32  : i32 {
      %10 = arith.index_cast %arg12 : i32 to index
      %c0_7 = arith.constant 0 : index
      %c0_8 = arith.constant 0 : index
      %11 = vector.load %arg3[%10, %c0_7, %c0_8] : memref<5x4x256xbf16, #tpu.memory_space<vmem>>, vector<1x4x256xbf16>
      %12 = vector.shape_cast %11 : vector<1x4x256xbf16> to vector<4x256xbf16>
      %cst = arith.constant dense<0.000000e+00> : vector<256x256xf32>
      %13 = tpu.matmul %5, %12, %cst {dimension_numbers = #tpu.dot_dimension_numbers<[0], [0], [1], [1], [0, 1, 1, 1], [], []>} : vector<4x256xbf16>, vector<4x256xbf16>, vector<256x256xf32> -> vector<256x256xf32>
      %14 = arith.index_cast %arg12 : i32 to index
      %c0_9 = arith.constant 0 : index
      %c0_10 = arith.constant 0 : index
      %15 = vector.load %arg4[%14, %c0_9, %c0_10] : memref<5x1x256xf32, #tpu.memory_space<vmem>>, vector<1x1x256xf32>
      %16 = vector.shape_cast %15 : vector<1x1x256xf32> to vector<1x256xf32>
      %17 = vector.broadcast %16 : vector<1x256xf32> to vector<256x256xf32>
      %18 = arith.addf %13, %17 : vector<256x256xf32>
      %cst_11 = arith.constant 0.000000e+00 : f32
      %cst_12 = arith.constant 6.000000e+00 : f32
      %19 = vector.broadcast %cst_11 : f32 to vector<256x256xf32>
      %20 = arith.maximumf %19, %18 : vector<256x256xf32>
      %21 = vector.broadcast %cst_12 : f32 to vector<256x256xf32>
      %22 = arith.minimumf %21, %20 : vector<256x256xf32>
      %23 = vector.shape_cast %22 : vector<256x256xf32> to vector<32x8x256xf32>
      %cst_13 = arith.constant dense<0.000000e+00> : vector<8x256xf32>
      %24 = vector.multi_reduction <add>, %23, %cst_13 [0] : vector<32x8x256xf32> to vector<8x256xf32>
      %25 = arith.index_cast %arg12 : i32 to index
      %c0_14 = arith.constant 0 : index
      %c0_15 = arith.constant 0 : index
      %26 = vector.load %arg11[%25, %c0_14, %c0_15] : memref<5x8x256xf32, #tpu.memory_space<vmem>>, vector<1x8x256xf32>
      %27 = vector.shape_cast %26 : vector<1x8x256xf32> to vector<8x256xf32>
      %28 = arith.addf %27, %24 : vector<8x256xf32>
      %29 = arith.index_cast %arg12 : i32 to index
      %c0_16 = arith.constant 0 : index
      %c0_17 = arith.constant 0 : index
      %30 = vector.load %arg11[%29, %c0_16, %c0_17] : memref<5x8x256xf32, #tpu.memory_space<vmem>>, vector<1x8x256xf32>
      %31 = vector.shape_cast %30 : vector<1x8x256xf32> to vector<8x256xf32>
      %32 = vector.shape_cast %28 : vector<8x256xf32> to vector<1x8x256xf32>
      tpu.vector_store %arg11[%29, %c0_16, %c0_17], %32 {strides = array<i32>} : memref<5x8x256xf32, #tpu.memory_space<vmem>>, vector<1x8x256xf32>,
    }
    %c5_i32_4 = arith.constant 5 : i32
    %c0_i32_5 = arith.constant 0 : i32
    %7 = arith.cmpi eq, %arg1, %c0_i32_5 : i32
    %8 = arith.extui %7 : i1 to i32
    %c0_i32_6 = arith.constant 0 : i32
    %9 = arith.cmpi ne, %8, %c0_i32_6 : i32
    scf.if %9 {
      %c0_7 = arith.constant 0 : index
      %c0_8 = arith.constant 0 : index
      %c0_9 = arith.constant 0 : index
      %10 = vector.load %arg11[%c0_7, %c0_8, %c0_9] : memref<5x8x256xf32, #tpu.memory_space<vmem>>, vector<5x8x256xf32>
      %cst = arith.constant dense<0.000000e+00> : vector<5x256xf32>
      %11 = vector.multi_reduction <add>, %10, %cst [1] : vector<5x8x256xf32> to vector<5x256xf32>
      %cst_10 = arith.constant 3.906250e-03 : f32
      %12 = vector.broadcast %cst_10 : f32 to vector<5x256xf32>
      %13 = arith.mulf %11, %12 : vector<5x256xf32>
      %c0_11 = arith.constant 0 : index
      %c0_12 = arith.constant 0 : index
      %c0_13 = arith.constant 0 : index
      %14 = vector.load %arg9[%c0_11, %c0_12, %c0_13] : memref<1x5x256xf32, #tpu.memory_space<vmem>>, vector<1x5x256xf32>
      %15 = vector.shape_cast %14 : vector<1x5x256xf32> to vector<5x256xf32>
      %16 = vector.shape_cast %13 : vector<5x256xf32> to vector<1x5x256xf32>
      tpu.vector_store %arg9[%c0_11, %c0_12, %c0_13], %16 {strides = array<i32>} : memref<1x5x256xf32, #tpu.memory_space<vmem>>, vector<1x5x256xf32>,
      %cst_14 = arith.constant 0.000000e+00 : f32
      %17 = vector.broadcast %cst_14 : f32 to vector<5x256xf32>
      %18 = arith.maximumf %13, %17 : vector<5x256xf32>
      %19 = arith.truncf %18 : vector<5x256xf32> to vector<5x256xbf16>
      %c0_15 = arith.constant 0 : index
      %c0_16 = arith.constant 0 : index
      %20 = vector.load %arg6[%c0_15, %c0_16] : memref<1x256xf32, #tpu.memory_space<vmem>>, vector<1x256xf32>
      %21 = vector.extract_strided_slice %19 {offsets = [0, 0], sizes = [1, 256], strides = [1, 1]} : vector<5x256xbf16> to vector<1x256xbf16>
      %c0_17 = arith.constant 0 : index
      %c0_18 = arith.constant 0 : index
      %c0_19 = arith.constant 0 : index
      %22 = vector.load %arg5[%c0_17, %c0_18, %c0_19] : memref<5x256x256xbf16, #tpu.memory_space<vmem>>, vector<1x256x256xbf16>
      %23 = vector.shape_cast %22 : vector<1x256x256xbf16> to vector<256x256xbf16>
      %cst_20 = arith.constant dense<0.000000e+00> : vector<1x256xf32>
      %24 = tpu.matmul %21, %23, %cst_20 {dimension_numbers = #tpu.dot_dimension_numbers<[1], [0], [0], [1], [0, 0, 1, 1], [], []>} : vector<1x256xbf16>, vector<256x256xbf16>, vector<1x256xf32> -> vector<1x256xf32>
      %25 = arith.addf %20, %24 : vector<1x256xf32>
      %26 = vector.extract_strided_slice %19 {offsets = [1, 0], sizes = [1, 256], strides = [1, 1]} : vector<5x256xbf16> to vector<1x256xbf16>
      %c1 = arith.constant 1 : index
      %c0_21 = arith.constant 0 : index
      %c0_22 = arith.constant 0 : index
      %27 = vector.load %arg5[%c1, %c0_21, %c0_22] : memref<5x256x256xbf16, #tpu.memory_space<vmem>>, vector<1x256x256xbf16>
      %28 = vector.shape_cast %27 : vector<1x256x256xbf16> to vector<256x256xbf16>
      %cst_23 = arith.constant dense<0.000000e+00> : vector<1x256xf32>
      %29 = tpu.matmul %26, %28, %cst_23 {dimension_numbers = #tpu.dot_dimension_numbers<[1], [0], [0], [1], [0, 0, 1, 1], [], []>} : vector<1x256xbf16>, vector<256x256xbf16>, vector<1x256xf32> -> vector<1x256xf32>
      %30 = arith.addf %25, %29 : vector<1x256xf32>
      %31 = vector.extract_strided_slice %19 {offsets = [2, 0], sizes = [1, 256], strides = [1, 1]} : vector<5x256xbf16> to vector<1x256xbf16>
      %c2 = arith.constant 2 : index
      %c0_24 = arith.constant 0 : index
      %c0_25 = arith.constant 0 : index
      %32 = vector.load %arg5[%c2, %c0_24, %c0_25] : memref<5x256x256xbf16, #tpu.memory_space<vmem>>, vector<1x256x256xbf16>
      %33 = vector.shape_cast %32 : vector<1x256x256xbf16> to vector<256x256xbf16>
      %cst_26 = arith.constant dense<0.000000e+00> : vector<1x256xf32>
      %34 = tpu.matmul %31, %33, %cst_26 {dimension_numbers = #tpu.dot_dimension_numbers<[1], [0], [0], [1], [0, 0, 1, 1], [], []>} : vector<1x256xbf16>, vector<256x256xbf16>, vector<1x256xf32> -> vector<1x256xf32>
      %35 = arith.addf %30, %34 : vector<1x256xf32>
      %36 = vector.extract_strided_slice %19 {offsets = [3, 0], sizes = [1, 256], strides = [1, 1]} : vector<5x256xbf16> to vector<1x256xbf16>
      %c3 = arith.constant 3 : index
      %c0_27 = arith.constant 0 : index
      %c0_28 = arith.constant 0 : index
      %37 = vector.load %arg5[%c3, %c0_27, %c0_28] : memref<5x256x256xbf16, #tpu.memory_space<vmem>>, vector<1x256x256xbf16>
      %38 = vector.shape_cast %37 : vector<1x256x256xbf16> to vector<256x256xbf16>
      %cst_29 = arith.constant dense<0.000000e+00> : vector<1x256xf32>
      %39 = tpu.matmul %36, %38, %cst_29 {dimension_numbers = #tpu.dot_dimension_numbers<[1], [0], [0], [1], [0, 0, 1, 1], [], []>} : vector<1x256xbf16>, vector<256x256xbf16>, vector<1x256xf32> -> vector<1x256xf32>
      %40 = arith.addf %35, %39 : vector<1x256xf32>
      %41 = vector.extract_strided_slice %19 {offsets = [4, 0], sizes = [1, 256], strides = [1, 1]} : vector<5x256xbf16> to vector<1x256xbf16>
      %c4 = arith.constant 4 : index
      %c0_30 = arith.constant 0 : index
      %c0_31 = arith.constant 0 : index
      %42 = vector.load %arg5[%c4, %c0_30, %c0_31] : memref<5x256x256xbf16, #tpu.memory_space<vmem>>, vector<1x256x256xbf16>
      %43 = vector.shape_cast %42 : vector<1x256x256xbf16> to vector<256x256xbf16>
      %cst_32 = arith.constant dense<0.000000e+00> : vector<1x256xf32>
      %44 = tpu.matmul %41, %43, %cst_32 {dimension_numbers = #tpu.dot_dimension_numbers<[1], [0], [0], [1], [0, 0, 1, 1], [], []>} : vector<1x256xbf16>, vector<256x256xbf16>, vector<1x256xf32> -> vector<1x256xf32>
      %45 = arith.addf %40, %44 : vector<1x256xf32>
      %cst_33 = arith.constant 0.000000e+00 : f32
      %46 = vector.broadcast %cst_33 : f32 to vector<1x256xf32>
      %47 = arith.maximumf %45, %46 : vector<1x256xf32>
      %48 = arith.truncf %47 : vector<1x256xf32> to vector<1x256xbf16>
      %c0_34 = arith.constant 0 : index
      %c0_35 = arith.constant 0 : index
      %49 = vector.load %arg7[%c0_34, %c0_35] : memref<256x128xbf16, #tpu.memory_space<vmem>>, vector<256x128xbf16>
      %cst_36 = arith.constant dense<0.000000e+00> : vector<1x128xf32>
      %50 = tpu.matmul %48, %49, %cst_36 {dimension_numbers = #tpu.dot_dimension_numbers<[1], [0], [0], [1], [0, 0, 1, 1], [], []>} : vector<1x256xbf16>, vector<256x128xbf16>, vector<1x128xf32> -> vector<1x128xf32>
      %c0_37 = arith.constant 0 : index
      %c0_38 = arith.constant 0 : index
      %51 = vector.load %arg8[%c0_37, %c0_38] : memref<1x128xf32, #tpu.memory_space<vmem>>, vector<1x128xf32>
      %52 = arith.addf %50, %51 : vector<1x128xf32>
      %c0_39 = arith.constant 0 : index
      %c0_40 = arith.constant 0 : index
      %c0_41 = arith.constant 0 : index
      %53 = vector.load %arg10[%c0_39, %c0_40, %c0_41] : memref<1x1x128xf32, #tpu.memory_space<vmem>>, vector<1x1x128xf32>
      %54 = vector.shape_cast %53 : vector<1x1x128xf32> to vector<1x128xf32>
      %55 = vector.shape_cast %52 : vector<1x128xf32> to vector<1x1x128xf32>
      tpu.vector_store %arg10[%c0_39, %c0_40, %c0_41], %55 {strides = array<i32>} : memref<1x1x128xf32, #tpu.memory_space<vmem>>, vector<1x1x128xf32>,
    } else {
    }
    return
  }
  func.func @transform_0(%arg0: i32, %arg1: i32) -> (i32, i32, i32) {
    %c0_i32 = arith.constant 0 : i32
    %c0_i32_0 = arith.constant 0 : i32
    return %arg0, %c0_i32, %arg1 : i32, i32, i32
  }
  func.func @transform_1(%arg0: i32, %arg1: i32) -> (i32, i32, i32) {
    %c0_i32 = arith.constant 0 : i32
    %c0_i32_0 = arith.constant 0 : i32
    %c0_i32_1 = arith.constant 0 : i32
    %c0_i32_2 = arith.constant 0 : i32
    return %c0_i32, %c0_i32_0, %c0_i32_1 : i32, i32, i32
  }
  func.func @transform_2(%arg0: i32, %arg1: i32) -> (i32, i32, i32) {
    %c0_i32 = arith.constant 0 : i32
    %c0_i32_0 = arith.constant 0 : i32
    %c0_i32_1 = arith.constant 0 : i32
    %c0_i32_2 = arith.constant 0 : i32
    return %c0_i32, %c0_i32_0, %c0_i32_1 : i32, i32, i32
  }
  func.func @transform_3(%arg0: i32, %arg1: i32) -> (i32, i32, i32) {
    %c0_i32 = arith.constant 0 : i32
    %c0_i32_0 = arith.constant 0 : i32
    %c0_i32_1 = arith.constant 0 : i32
    %c0_i32_2 = arith.constant 0 : i32
    return %c0_i32, %c0_i32_0, %c0_i32_1 : i32, i32, i32
  }
  func.func @transform_4(%arg0: i32, %arg1: i32) -> (i32, i32) {
    %c0_i32 = arith.constant 0 : i32
    %c0_i32_0 = arith.constant 0 : i32
    %c0_i32_1 = arith.constant 0 : i32
    return %c0_i32, %c0_i32_0 : i32, i32
  }
  func.func @transform_5(%arg0: i32, %arg1: i32) -> (i32, i32) {
    %c0_i32 = arith.constant 0 : i32
    %c0_i32_0 = arith.constant 0 : i32
    %c0_i32_1 = arith.constant 0 : i32
    return %c0_i32, %c0_i32_0 : i32, i32
  }
  func.func @transform_6(%arg0: i32, %arg1: i32) -> (i32, i32) {
    %c0_i32 = arith.constant 0 : i32
    %c0_i32_0 = arith.constant 0 : i32
    %c0_i32_1 = arith.constant 0 : i32
    return %c0_i32, %c0_i32_0 : i32, i32
  }
  func.func @transform_7(%arg0: i32, %arg1: i32) -> (i32, i32, i32) {
    %c0_i32 = arith.constant 0 : i32
    %c0_i32_0 = arith.constant 0 : i32
    %c0_i32_1 = arith.constant 0 : i32
    return %arg0, %c0_i32, %c0_i32_0 : i32, i32, i32
  }
  func.func @transform_8(%arg0: i32, %arg1: i32) -> (i32, i32, i32) {
    %c0_i32 = arith.constant 0 : i32
    %c0_i32_0 = arith.constant 0 : i32
    %c0_i32_1 = arith.constant 0 : i32
    return %arg0, %c0_i32, %c0_i32_0 : i32, i32, i32
  }
}

</mosaic_0001>

<bundles_post_ra>
// kernel: tpu_custom_call.1
= control target key start
LH: loop header
LB: loop body
LE: loop exit
PB: predicated region body
PF: predicated region fallthrough
CT: control target
= control target key end

     0   :  { %s4474_s0 = inlined_call_operand.hbm [shape: f32[2,4,256], index: 0, kind: input, shape index: {}]   ;;  %s4475_s1 = inlined_call_operand.hbm [shape: bf16[5,4,256], index: 1, kind: input, shape index: {}]   ;;  %s4476_s2 = inlined_call_operand.hbm [shape: f32[5,1,256], index: 2, kind: input, shape index: {}]   ;;  %s4477_s3 = inlined_call_operand.hbm [shape: bf16[5,256,256], index: 3, kind: input, shape index: {}]   ;;  %s4478_s4 = inlined_call_operand.vmem [shape: f32[1,256], index: 4, kind: input, shape index: {}]   ;;  %s4479_s5 = inlined_call_operand.hbm [shape: bf16[256,128], index: 5, kind: input, shape index: {}]   ;;  %s4480_s6 = inlined_call_operand.vmem [shape: f32[1,128], index: 6, kind: input, shape index: {}]   ;;  %s4481_s7 = inlined_call_operand.vmem [shape: f32[2,5,256], index: 7, kind: output, shape index: {0}]   ;;  %s4482_s8 = inlined_call_operand.hbm [shape: f32[2,1,128], index: 8, kind: output, shape index: {1}]  }
   0x1   :  { %4484 = sst [smem:[#allocation17_spill]] %s4475_s1 }
   0x2   :  { %4485 = sst [smem:[#allocation18_spill]] %s4476_s2 }
   0x3   :  { %4486 = sst [smem:[#allocation19_spill]] %s4477_s3 }
   0x4   :  { %14 = vsyncpa [#allocation4], 0 }
   0x5   :  { %16 = vsyncpa [#allocation4 + $0x1], 0 }
   0x6   :  { %17 = vsyncpa [#allocation7], 0 }
   0x7   :  { %18 = vsyncpa [#allocation10], 0 }
   0x8   :  { %19 = vsyncpa [#allocation5], 0 }
   0x9   :  { %21 = vsyncpa [#allocation5 + $0x1], 0  ;;  %s4026_s27 = smov 0   ;;  %s4028_s28 = smov 0  }
   0xa   :  { %s4030_s29 = smov 0   ;;  %s4032_s30 = smov 0  }
   0xb   :  { %s4034_s9 = smov 0   ;;  %s4036_s10 = smov 0  }
   0xc LB: > { %s4483_s11 = sadd.s32 4294967295, %s3964_s10   ;;  %p2661_p0 = scmp.ge.s32.totalorder %s3964_s10, 1  ;;  %s3964_s10 = sphi %s4036_s10, %s27_s10   ;;  %s3960_s9 = sphi %s4034_s9, %s4501_s9   ;;  %s3956_s30 = sphi %s4032_s30, %s4500_s30   ;;  %s3952_s29 = sphi %s4030_s29, %s4499_s29   ;;  %s3948_s28 = sphi %s4028_s28, %s4498_s28   ;;  %s3944_s27 = sphi %s4026_s27, %s4497_s27  }
   0xd   : > { %p4060_p1 = scmp.eq.s32.totalorder %s4483_s11, 0  ;;  %p250_p2 = scmp.lt.s32.totalorder %s3964_s10, 3 }
   0xe   : > { %s4488_s1 = sld [smem:[#allocation17_spill]]  ;;  %s3970_s17 = smov [#allocation6]  }
   0xf   : > { %p4068_p3 = pnand %p2661_p0, %p250_p2  ;;  %s263_s18 = sshll.u32 %s3970_s17, 4  ;;  %s264_s18 = int_to_ptr.vmem [resolvable:$true] %s263_s18 }
  0x10   : > { %p2666_p6 = scmp.ge.s32.totalorder %s3964_s10, 2  ;;  %s4491_s3 = sld [smem:[#allocation19_spill]] }
  0x11   : > { %p3621_p4 = pneg %p4068_p3  ;;  %s3971_s23 = smov 64  }
  0x12   : > { %s3972_s24 = smov 4   ;;  %s3973_s25 = smov [#allocation9]  }
  0x13   : > { %p4076_p5 = pnand %p3621_p4, %p4060_p1  ;;  %s291_s26 = sshll.u32 %s3973_s25, 4  ;;  %s292_s26 = int_to_ptr.vmem [resolvable:$true] %s291_s26 }
  0x14   : > { %s261_s15 = sshll.u32 %s4488_s1, 4  ;;  %s3974_s13 = smov 128   ;;  %s262_s15 = int_to_ptr.hbm [resolvable:$true] %s261_s15 }
  0x15   : > { %3624 = dma.hbm_to_vmem [thread:$0]  (!%p4076_p5), %s262_s15, 320, %s264_s18, [#allocation7], %s3971_s23, %s3971_s23, %s3972_s24  }
  0x16   : > { %s289_s22 = sshll.u32 %s4491_s3, 4  ;;  %s3975_s14 = smov 8   ;;  %s290_s22 = int_to_ptr.hbm [resolvable:$true] %s289_s22 }
  0x17   : > { %3630 = dma.hbm_to_vmem [thread:$0]  (!%p4076_p5), %s290_s22, 20480, %s292_s26, [#allocation10], %s3974_s13, %s3974_s13, %s3975_s14  }
  0x18   : > { %s4492_s2 = sld [smem:[#allocation18_spill]]  ;;  %s3976_s21 = smov [#allocation8]  }
  0x19   : > { %s277_s15 = sshll.u32 %s3976_s21, 4  ;;  %s306_s1 = sshll.u32 %s4479_s5, 4  ;;  %s278_s15 = int_to_ptr.vmem [resolvable:$true] %s277_s15  ;;  %s307_s1 = int_to_ptr.hbm [resolvable:$true] %s306_s1 }
  0x1a   : > { %s3977_s22 = smov 32   ;;  %s3978_s26 = smov 2  }
  0x1b   : > { %s3979_s11 = smov [#allocation11]   ;;  %s39_s14 = sadd.s32 1, %s3960_s9 }
  0x1c   : > { %s308_s13 = sshll.u32 %s3979_s11, 4  ;;  %s2660_s17 = sadd.s32 4294967294, %s3964_s10   ;;  %s309_s13 = int_to_ptr.vmem [resolvable:$true] %s308_s13 }
  0x1d   : > { %3633 = dma.hbm_to_vmem [thread:$0]  (!%p4076_p5), %s307_s1, 2048, %s309_s13, [#allocation10], %s3971_s23, %s3971_s23, %s3972_s24  }
  0x1e   : > { %s275_s20 = sshll.u32 %s4492_s2, 4  ;;  %p41_p7 = scmp.ge.s32.totalorder %s39_s14, 2  ;;  %s276_s20 = int_to_ptr.hbm [resolvable:$true] %s275_s20 }
  0x1f   : > { %3627 = dma.hbm_to_vmem [thread:$0]  (!%p4076_p5), %s276_s20, 160, %s278_s15, [#allocation7], %s3977_s22, %s3977_s22, %s3978_s26  }
  0x20   : > { %s48_s21 = sadd.s32 1, %s3952_s29  ;;  %p55_p8 = scmp.ne.s32.totalorder %s3952_s29, %s3948_s28 }
  0x21   : > { %s4503_s14 = smov (%p41_p7, %s39_s14), 0  ;;  %p56_p9 = scmp.eq.s32.totalorder %s3964_s10, 0 }
  0x22   : > { %p61_p10 = scmp.ne.s32.totalorder %s3948_s28, %s3944_s27  ;;  %s43_s20 = ssub.s32 %s3960_s9, %s4503_s14 }
  0x23   : > { %s4493_s15 = sadd.s32 4294967295, %s3964_s10   ;;  %p46_p12 = scmp.eq.s32.totalorder %s43_s20, 0 }
  0x24   : > { %p237_p11 = scmp.eq.s32.totalorder %s4493_s15, 1  ;;  %p4114_p13 = por %p4060_p1, %p61_p10 }
  0x25   : > { %p243_p2 = scmp.eq.s32.totalorder %s2660_s17, 1  ;;  %p57_p4 = por %p56_p9, %p55_p8 }
  0x26   : > { %p4118_p0 = por %p237_p11, %p55_p8  ;;  %s325_s18 = sand.u32 1, %s3952_s29  }
  0x27   : > { %s4123_s23 = scalar_select %p46_p12, %s3952_s29, %s48_s21  }
  0x28   : > { %p4125_p5 = por %p243_p2, %p61_p10  ;;  %s3419_s25 = sshll.u32 %s3960_s9, 3 }
  0x29   : > { %p3646_p7 = scmp.lt.s32.totalorder %s3964_s10, 2  ;;  %s2667_s22 = sshll.u32 %s325_s18, 3 }
  0x2a   : > { %s336_s13 = scalar_lea.hbm %s4474_s0, %s3419_s25  ;;  %s329_s15 = scalar_lea.vmem [#allocation3], %s2667_s22 }
  0x2b   : > { %s338_s20 = sshll.u32 %s336_s13, 4  ;;  %s340_s2 = sshll.u32 %s329_s15, 4  ;;  %s339_s20 = int_to_ptr.hbm [resolvable:$true] %s338_s20  ;;  %s341_s2 = int_to_ptr.vmem [resolvable:$true] %s340_s2 }
  0x2c   : > { %p3635_p11 = pnand %p3646_p7, %p57_p4  ;;  %s326_s17 = scalar_lea.sflag [#allocation4], %s325_s18 }
  0x2d   : > { %349 = sbr.rel (%p4068_p3) target bundleno = 958 (0x3be), region = 48  ;;  %s4138_s21 = sand.u32 (!%p4068_p3), 1, %s3948_s28  }
  0x2e   : > { %3637 = dma.hbm_to_vmem [thread:$0]  (!%p3635_p11), %s339_s20, 128, %s341_s2, %s326_s17  }
  0x2f   : > { %s2671_s3 = sshll.u32 (!%p4068_p3), %s4138_s21, 3  ;;  %s352_s26 = scalar_lea.sflag (!%p4068_p3), [#allocation4], %s4138_s21 }
  0x30   : > { %s355_s25 = scalar_lea.vmem (!%p4068_p3), [#allocation3], %s2671_s3 }
  0x32   : > { %3927 = dma.done.wait (%p4114_p13), %s352_s26, 128  }
  0x33   : > { %3929 = vsyncadd (%p4114_p13), %s352_s26, 4294967168 }
  0x34   : > { %3931 = dma.done.wait (%p4060_p1), [#allocation7], 480  }
  0x35   : > { %3933 = vsyncadd (%p4060_p1), [#allocation7], 4294966816 }
  0x36   : > { %3935 = dma.done.wait (%p4060_p1), [#allocation10], 22528  }
  0x37   : > { %3937 = vsyncadd (%p4060_p1), [#allocation10], 4294944768  ;;  %p414_p3 = scmp.lt.s32.totalorder %s3956_s30, 1  ;;  %v3980_v0 = vmov 0.0   ;;  %v434_v1 = vld [vmem:[%s355_s25] sm:$0xff]  ;;  %s412_s12 = scalar_lea.vmem [#allocation12], %s4138_s21 }
  0x38   : > { %424 = vst [vmem:[#allocation2] sm:$0xff] %v3980_v0  ;;  %s4170_s22 = smov 0  }
  0x39   : > { %s415_s2 = scalar_select %p414_p3, %s3956_s30, 1  ;;  %425 = vst [vmem:[#allocation2 + $0x8] sm:$0xff] %v3980_v0 }
  0x3a   : > { %426 = vst [vmem:[#allocation2 + $0x10] sm:$0xff] %v3980_v0 }
  0x3b   : > { %s3420_s3 = sshll.u32 %s415_s2, 4  ;;  %427 = vst [vmem:[#allocation2 + $0x18] sm:$0xff] %v3980_v0 }
  0x3c   : > { %s4159_s18 = scalar_lea.vmem %s4481_s7, %s3420_s3  ;;  %428 = vst [vmem:[#allocation2 + $0x20] sm:$0xff] %v3980_v0 }
  0x3d   : > { %429 = vst [vmem:[#allocation2 + $0x28] sm:$0xff] %v3980_v0 }
  0x3e   : > { %430 = vst [vmem:[#allocation2 + $0x30] sm:$0xff] %v3980_v0 }
  0x3f   : > { %436 = vst [vmem:[#allocation1] ss:$2 sm:$0xff] %v434_v1 }
  0x40   : > { %431 = vst [vmem:[#allocation2 + $0x38] sm:$0xff] %v3980_v0 }
  0x41   : > { %432 = vst [vmem:[#allocation2 + $0x40] sm:$0xff] %v3980_v0 }
  0x42   : > { %433 = vst [vmem:[#allocation2 + $0x48] sm:$0xff] %v3980_v0 }
  0x46   : > { %v4161_v2 = vld.sshfl [vmem:[#allocation1] sm:$0xff pattern:$0x75316420]  ;;  %v4163_v3 = vld.sshfl [vmem:[#allocation1 + $0x8] sm:$0xff pattern:$0x75316420] }
  0x47   : > { %v441_v4 = vpack.c.bf16 %v4161_v2, %v4161_v2  ;;  %v442_v5 = vpack.c.bf16 %v4163_v3, %v4163_v3 }
  0x48 LB: >> { %s3421_s11 = sshll.u32 %s3968_s22, 2  ;;  %vm537_vm0 = vcmask 1041408   ;;  %vm488_vm1 = vcmask 31744   ;;  %s2678_s20 = sshll.u32 %s3968_s22, 1  ;;  %s3968_s22 = sphi %s4170_s22, %s448_s22  }
  0x49   : >> { %460 = vxpose.binary.xlu0.c.b16.start.end [1/2] (short) %v442_v5, %v441_v4, 128  ;;  %s451_s13 = scalar_lea.vmem [#allocation6], %s3421_s11  ;;  %s453_s15 = scalar_lea.vmem [#allocation8], %s2678_s20 }
  0x4a   : >> { %v452_v6 = vld [vmem:[%s451_s13] sm:$0xf]  ;;  %s3422_s17 = sshll.u32 %s3968_s22, 4  ;;  %s448_s22 = sadd.s32 1, %s3968_s22  }
  0x4b   : >> { %485 = vst [vmem:[#allocation1] ss:$4 sm:$0xff] %v452_v6  ;;  %v454_v27 = vld [vmem:[%s453_s15] sm:$0x3]  ;;  %s911_s26 = scalar_lea.vmem [#allocation2], %s3422_s17  ;;  %p445_p1 = scmp.ge.s32.totalorder %s448_s22, 5  }
  0x4c   : >> { %v4215_v30 = vperm.slane %v454_v27, 0  ;;  %v4217_v31 = vperm.slane %v454_v27, 1  ;;  %v3435_v3 = vld [vmem:[#allocation9 + $0x64] sm:$0xf] (%p445_p1)  ;;  %v2765_v4 = vld [vmem:[#allocation9 + $0x68] sm:$0xf0] (%p445_p1)  ;;  %s2504_s1 = scalar_lea.hbm (%p445_p1), %s4482_s8, %s3956_s30 }
  0x4d   : > { %v3451_v5 = vld [vmem:[#allocation9 + $0xe4] sm:$0xf] (%p445_p1)  ;;  %vm1011_vm2 = vcmask (%p445_p1), 1041409   ;;  %vm1013_vm3 = vcmask (%p445_p1), 1042434   ;;  %vm1015_vm4 = vcmask (%p445_p1), 1043459   ;;  %vm1017_vm5 = vcmask (%p445_p1), 1044484  }
  0x4e   : > { %vm1295_vm6 = vcmask (%p445_p1), 1040384   ;;  %s2506_s11 = sshll.u32 (%p445_p1), %s412_s12, 4  ;;  %s2508_s13 = sshll.u32 (%p445_p1), %s2504_s1, 4  ;;  %s2507_s11 = int_to_ptr.vmem [resolvable:$true] %s2506_s11  ;;  %s2509_s13 = int_to_ptr.hbm [resolvable:$true] %s2508_s13 }
  0x4f   : > { %s2493_s20 = scalar_lea.sflag (%p445_p1), [#allocation5], %s4138_s21  ;;  %s3884_s15 = sshra.s32 (%p445_p1), %s2509_s13, 4  ;;  %s3885_s15 = int_to_ptr.hbm [resolvable:$true] %s3884_s15 }
  0x50   : > { %s3886_s30 = scalar_lea.hbm (%p445_p1), %s3885_s15, 1  ;;  %s3890_s25 = scalar_lea.hbm (%p445_p1), %s4482_s8, 2 }
  0x51   : > { %p3887_p8 = scmp.ne.s32.totalorder (%p445_p1), %s3885_s15, %s3886_s30  ;;  %p3891_p12 = scmp.lt.s32.totalorder (%p445_p1), %s3885_s15, %s4482_s8 }
  0x52   : >> { %v486_v7 = vld.sshfl [vmem:[#allocation1] sm:$0xff pattern:$0x73625140]  ;;  %v487_v8 = vld.sshfl [vmem:[#allocation1 + $0x8] sm:$0xff pattern:$0x73625140]  ;;  %p3892_p13 = scmp.lt.s32.totalorder (%p445_p1), %s3890_s25, %s3886_s30 }
  0x53   : >> { %v538_v9 = vsel %vm537_vm0, %v486_v7, 0  ;;  %v540_v10 = vsel %vm537_vm0, %v487_v8, 0  ;;  %p3888_p9 = pnand (%p445_p1), %p3887_p8, %p4118_p0 }
  0x54   : >> { %549 = vmatpush.bf16.msra.mxu0 %v538_v9  ;;  %638 = vmatpush.bf16.msra.mxu1 %v540_v10  ;;  %p3893_p2 = por (%p445_p1), %p3892_p13, %p3891_p12 }
  0x55   : >> { %3599 = vmatpush.bf16.msra.mxu2 %v538_v9  ;;  %3600 = vmatpush.bf16.msra.mxu3 %v540_v10  ;;  %p3889_p10 = pneg (%p445_p1), %p3888_p9 }
  0x57   : > { %p3894_p4 = pnand (%p445_p1), %p3893_p2, %p3889_p10 }
  0xf5   : >> { %v468_v11 = vpop.trf.xlu0 }
  0xf6   : >> { %2680 = vmatmul.msk.bf16.vlgmr.msra.gmra.mxu0 %vm488_vm1, %v468_v11  ;;  %2696 = vmatmul.msk.bf16.vlgmr.msra.gmra.mxu1 %vm488_vm1, %v468_v11 }
  0xfd   : >> { %v469_v12 = vpop.trf.xlu0 }
  0xfe   : >> { %2688 = vmatmul.msk.bf16.vlgmr.msra.gmra.mxu2 %vm488_vm1, %v469_v12  ;;  %2704 = vmatmul.msk.bf16.vlgmr.msra.gmra.mxu3 %vm488_vm1, %v469_v12 }
 0x105   : >> { %v470_v13 = vpop.trf.xlu0 }
 0x106   : >> { %2681 = vmatmul.msk.bf16.gmra.mxu0 %vm488_vm1, %v470_v13  ;;  %2697 = vmatmul.msk.bf16.gmra.mxu1 %vm488_vm1, %v470_v13 }
 0x10d   : >> { %v471_v14 = vpop.trf.xlu0 }
 0x10e   : >> { %2689 = vmatmul.msk.bf16.gmra.mxu2 %vm488_vm1, %v471_v14  ;;  %2705 = vmatmul.msk.bf16.gmra.mxu3 %vm488_vm1, %v471_v14 }
 0x115   : >> { %v472_v15 = vpop.trf.xlu0 }
 0x116   : >> { %2682 = vmatmul.msk.bf16.gmra.mxu0 %vm488_vm1, %v472_v15  ;;  %2698 = vmatmul.msk.bf16.gmra.mxu1 %vm488_vm1, %v472_v15 }
 0x11d   : >> { %v473_v16 = vpop.trf.xlu0 }
 0x11e   : >> { %2690 = vmatmul.msk.bf16.gmra.mxu2 %vm488_vm1, %v473_v16  ;;  %2706 = vmatmul.msk.bf16.gmra.mxu3 %vm488_vm1, %v473_v16 }
 0x125   : >> { %v474_v17 = vpop.trf.xlu0 }
 0x126   : >> { %2683 = vmatmul.msk.bf16.gmra.mxu0 %vm488_vm1, %v474_v17  ;;  %2699 = vmatmul.msk.bf16.gmra.mxu1 %vm488_vm1, %v474_v17 }
 0x12d   : >> { %v475_v18 = vpop.trf.xlu0 }
 0x12e   : >> { %2691 = vmatmul.msk.bf16.gmra.mxu2 %vm488_vm1, %v475_v18  ;;  %2707 = vmatmul.msk.bf16.gmra.mxu3 %vm488_vm1, %v475_v18 }
 0x135   : >> { %v476_v19 = vpop.trf.xlu0 }
 0x136   : >> { %2684 = vmatmul.msk.bf16.gmra.mxu0 %vm488_vm1, %v476_v19  ;;  %2700 = vmatmul.msk.bf16.gmra.mxu1 %vm488_vm1, %v476_v19 }
 0x13d   : >> { %v477_v20 = vpop.trf.xlu0 }
 0x13e   : >> { %2692 = vmatmul.msk.bf16.gmra.mxu2 %vm488_vm1, %v477_v20  ;;  %2708 = vmatmul.msk.bf16.gmra.mxu3 %vm488_vm1, %v477_v20 }
 0x145   : >> { %v478_v21 = vpop.trf.xlu0 }
 0x146   : >> { %2685 = vmatmul.msk.bf16.gmra.mxu0 %vm488_vm1, %v478_v21  ;;  %2701 = vmatmul.msk.bf16.gmra.mxu1 %vm488_vm1, %v478_v21 }
 0x14d   : >> { %v479_v22 = vpop.trf.xlu0 }
 0x14e   : >> { %2693 = vmatmul.msk.bf16.gmra.mxu2 %vm488_vm1, %v479_v22  ;;  %2709 = vmatmul.msk.bf16.gmra.mxu3 %vm488_vm1, %v479_v22 }
 0x155   : >> { %v480_v23 = vpop.trf.xlu0 }
 0x156   : >> { %2686 = vmatmul.msk.bf16.gmra.mxu0 %vm488_vm1, %v480_v23  ;;  %2702 = vmatmul.msk.bf16.gmra.mxu1 %vm488_vm1, %v480_v23 }
 0x15d   : >> { %v481_v24 = vpop.trf.xlu0 }
 0x15e   : >> { %2694 = vmatmul.msk.bf16.gmra.mxu2 %vm488_vm1, %v481_v24  ;;  %2710 = vmatmul.msk.bf16.gmra.mxu3 %vm488_vm1, %v481_v24 }
 0x165   : >> { %v482_v25 = vpop.trf.xlu0 }
 0x166   : >> { %2687 = vmatmul.msk.bf16.gmra.mxu0 %vm488_vm1, %v482_v25  ;;  %2703 = vmatmul.msk.bf16.gmra.mxu1 %vm488_vm1, %v482_v25 }
 0x16d   : >> { %v483_v26 = vpop.trf.xlu0 }
 0x16e   : >> { %2695 = vmatmul.msk.bf16.gmra.mxu2 %vm488_vm1, %v483_v26  ;;  %2711 = vmatmul.msk.bf16.gmra.mxu3 %vm488_vm1, %v483_v26 }
 0x173   : >> { %v551_v28 = vpop.f32.mrf.mxu0  ;;  %v640_v29 = vpop.f32.mrf.mxu1 }
 0x174   : >> { %v552_v32 = vadd.f32 %v551_v28, %v4215_v30  ;;  %v641_v33 = vadd.f32 %v640_v29, %v4217_v31 }
 0x176   : >> { %v720_v36 = vmax.f32 %v552_v32, 0.0  ;;  %v721_v37 = vmax.f32 %v641_v33, 0.0 }
 0x178   : >> { %v784_v42 = vmin.f32 %v720_v36, 6.0  ;;  %v785_v43 = vmin.f32 %v721_v37, 6.0 }
 0x17b   : >> { %v553_v34 = vpop.f32.mrf.mxu0  ;;  %v642_v35 = vpop.f32.mrf.mxu1 }
 0x17c   : >> { %v554_v38 = vadd.f32 %v553_v34, %v4215_v30  ;;  %v643_v39 = vadd.f32 %v642_v35, %v4217_v31 }
 0x17e   : >> { %v722_v40 = vmax.f32 %v554_v38, 0.0  ;;  %v723_v41 = vmax.f32 %v643_v39, 0.0 }
 0x180   : >> { %v786_v44 = vmin.f32 %v722_v40, 6.0  ;;  %v787_v45 = vmin.f32 %v723_v41, 6.0 }
 0x181   : >> { %v4223_v46 = vpop.f32.mrf.mxu2  ;;  %v4225_v47 = vpop.f32.mrf.mxu3 }
 0x182   : >> { %v848_v48 = vadd.f32 %v786_v44, %v784_v42  ;;  %v879_v49 = vadd.f32 %v787_v45, %v785_v43 }
 0x183   : >> { %v556_v50 = vpop.f32.mrf.mxu0  ;;  %v645_v51 = vpop.f32.mrf.mxu1 }
 0x184   : >> { %v557_v52 = vadd.f32 %v556_v50, %v4215_v30  ;;  %v646_v53 = vadd.f32 %v645_v51, %v4217_v31 }
 0x186   : >> { %v724_v54 = vmax.f32 %v557_v52, 0.0  ;;  %v725_v55 = vmax.f32 %v646_v53, 0.0 }
 0x188   : >> { %v788_v56 = vmin.f32 %v724_v54, 6.0  ;;  %v789_v57 = vmin.f32 %v725_v55, 6.0 }
 0x189   : >> { %v4229_v58 = vpop.f32.mrf.mxu2  ;;  %v4231_v59 = vpop.f32.mrf.mxu3 }
 0x18a   : >> { %v849_v60 = vadd.f32 %v848_v48, %v788_v56  ;;  %v880_v61 = vadd.f32 %v879_v49, %v789_v57 }
 0x18b   : >> { %v558_v62 = vpop.f32.mrf.mxu0  ;;  %v647_v63 = vpop.f32.mrf.mxu1 }
 0x18c   : >> { %v559_v0 = vadd.f32 %v558_v62, %v4215_v30  ;;  %v648_v1 = vadd.f32 %v647_v63, %v4217_v31 }
 0x18e   : >> { %v726_v6 = vmax.f32 %v559_v0, 0.0  ;;  %v727_v7 = vmax.f32 %v648_v1, 0.0 }
 0x190   : >> { %v790_v8 = vmin.f32 %v726_v6, 6.0  ;;  %v791_v9 = vmin.f32 %v727_v7, 6.0 }
 0x191   : >> { %v4235_v10 = vpop.f32.mrf.mxu2  ;;  %v4237_v11 = vpop.f32.mrf.mxu3 }
 0x192   : >> { %v850_v12 = vadd.f32 %v849_v60, %v790_v8  ;;  %v881_v13 = vadd.f32 %v880_v61, %v791_v9 }
 0x193   : >> { %v561_v14 = vpop.f32.mrf.mxu0  ;;  %v650_v15 = vpop.f32.mrf.mxu1 }
 0x194   : >> { %v562_v16 = vadd.f32 %v561_v14, %v4215_v30  ;;  %v651_v17 = vadd.f32 %v650_v15, %v4217_v31 }
 0x196   : >> { %v728_v18 = vmax.f32 %v562_v16, 0.0  ;;  %v729_v19 = vmax.f32 %v651_v17, 0.0 }
 0x198   : >> { %v792_v20 = vmin.f32 %v728_v18, 6.0  ;;  %v793_v21 = vmin.f32 %v729_v19, 6.0 }
 0x199   : >> { %v4241_v22 = vpop.f32.mrf.mxu2  ;;  %v4243_v23 = vpop.f32.mrf.mxu3 }
 0x19a   : >> { %v851_v24 = vadd.f32 %v850_v12, %v792_v20  ;;  %v882_v25 = vadd.f32 %v881_v13, %v793_v21 }
 0x19b   : >> { %v563_v26 = vpop.f32.mrf.mxu0  ;;  %v652_v27 = vpop.f32.mrf.mxu1 }
 0x19c   : >> { %v564_v56 = vadd.f32 %v563_v26, %v4215_v30  ;;  %v653_v57 = vadd.f32 %v652_v27, %v4217_v31 }
 0x19e   : >> { %v730_v0 = vmax.f32 %v564_v56, 0.0  ;;  %v731_v1 = vmax.f32 %v653_v57, 0.0 }
 0x1a0   : >> { %v794_v16 = vmin.f32 %v730_v0, 6.0  ;;  %v795_v17 = vmin.f32 %v731_v1, 6.0 }
 0x1a1   : >> { %v4245_v28 = vpop.f32.mrf.mxu2  ;;  %v4247_v29 = vpop.f32.mrf.mxu3 }
 0x1a2   : >> { %v852_v57 = vadd.f32 %v851_v24, %v794_v16 }
 0x1a3   : >> { %v566_v32 = vpop.f32.mrf.mxu0  ;;  %v655_v33 = vpop.f32.mrf.mxu1 }
 0x1a4   : >> { %v567_v60 = vadd.f32 %v566_v32, %v4215_v30  ;;  %v656_v61 = vadd.f32 %v655_v33, %v4217_v31 }
 0x1a6   : >> { %v732_v12 = vmax.f32 %v567_v60, 0.0  ;;  %v733_v13 = vmax.f32 %v656_v61, 0.0 }
 0x1a8   : >> { %v796_v26 = vmin.f32 %v732_v12, 6.0  ;;  %v797_v27 = vmin.f32 %v733_v13, 6.0 }
 0x1a9   : >> { %v4249_v34 = vpop.f32.mrf.mxu2  ;;  %v4251_v35 = vpop.f32.mrf.mxu3 }
 0x1ab   : >> { %v568_v36 = vpop.f32.mrf.mxu0  ;;  %v657_v37 = vpop.f32.mrf.mxu1 }
 0x1ac   : >> { %v569_v6 = vadd.f32 %v568_v36, %v4215_v30  ;;  %v658_v7 = vadd.f32 %v657_v37, %v4217_v31 }
 0x1ae   : >> { %v734_v18 = vmax.f32 %v569_v6, 0.0  ;;  %v735_v19 = vmax.f32 %v658_v7, 0.0  ;;  %v853_v6 = vadd.f32 %v852_v57, %v796_v26 }
 0x1b0   : >> { %v798_v60 = vmin.f32 %v734_v18, 6.0  ;;  %v799_v61 = vmin.f32 %v735_v19, 6.0 }
 0x1b1   : >> { %v4253_v38 = vpop.f32.mrf.mxu2  ;;  %v4255_v39 = vpop.f32.mrf.mxu3 }
 0x1b2   : >> { %v854_v16 = vadd.f32 %v853_v6, %v798_v60 }
 0x1b3   : >> { %v571_v40 = vpop.f32.mrf.mxu0  ;;  %v660_v41 = vpop.f32.mrf.mxu1 }
 0x1b4   : >> { %v572_v14 = vadd.f32 %v571_v40, %v4215_v30  ;;  %v661_v15 = vadd.f32 %v660_v41, %v4217_v31  ;;  %v883_v41 = vadd.f32 %v882_v25, %v795_v17 }
 0x1b6   : >> { %v736_v32 = vmax.f32 %v572_v14, 0.0  ;;  %v737_v33 = vmax.f32 %v661_v15, 0.0  ;;  %v884_v7 = vadd.f32 %v883_v41, %v797_v27 }
 0x1b8   : >> { %v800_v12 = vmin.f32 %v736_v32, 6.0  ;;  %v801_v13 = vmin.f32 %v737_v33, 6.0  ;;  %v885_v17 = vadd.f32 %v884_v7, %v799_v61 }
 0x1b9   : >> { %v4257_v42 = vpop.f32.mrf.mxu2  ;;  %v4259_v43 = vpop.f32.mrf.mxu3 }
 0x1bb   : >> { %v573_v44 = vpop.f32.mrf.mxu0  ;;  %v662_v45 = vpop.f32.mrf.mxu1 }
 0x1bc   : >> { %v574_v20 = vadd.f32 %v573_v44, %v4215_v30  ;;  %v663_v21 = vadd.f32 %v662_v45, %v4217_v31 }
 0x1be   : >> { %v738_v0 = vmax.f32 %v574_v20, 0.0  ;;  %v739_v1 = vmax.f32 %v663_v21, 0.0  ;;  %v855_v20 = vadd.f32 %v854_v16, %v800_v12  ;;  %v886_v21 = vadd.f32 %v885_v17, %v801_v13 }
 0x1c0   : >> { %v802_v18 = vmin.f32 %v738_v0, 6.0 }
 0x1c1   : >> { %v4261_v48 = vpop.f32.mrf.mxu2  ;;  %v4263_v49 = vpop.f32.mrf.mxu3 }
 0x1c2   : >> { %v856_v60 = vadd.f32 %v855_v20, %v802_v18 }
 0x1c3   : >> { %v576_v50 = vpop.f32.mrf.mxu0  ;;  %v665_v51 = vpop.f32.mrf.mxu1 }
 0x1c4   : >> { %v577_v36 = vadd.f32 %v576_v50, %v4215_v30  ;;  %v666_v37 = vadd.f32 %v665_v51, %v4217_v31 }
 0x1c6   : >> { %v740_v14 = vmax.f32 %v577_v36, 0.0  ;;  %v741_v50 = vmax.f32 %v666_v37, 0.0 }
 0x1c8   : >> { %v804_v32 = vmin.f32 %v740_v14, 6.0  ;;  %v592_v14 = vadd.f32 %v4223_v46, %v4215_v30 }
 0x1c9   : >> { %v4265_v52 = vpop.f32.mrf.mxu2  ;;  %v4267_v53 = vpop.f32.mrf.mxu3 }
 0x1ca   : >> { %v857_v6 = vadd.f32 %v856_v60, %v804_v32 }
 0x1cb   : >> { %v578_v54 = vpop.f32.mrf.mxu0  ;;  %v667_v55 = vpop.f32.mrf.mxu1 }
 0x1cc   : >> { %v579_v44 = vadd.f32 %v578_v54, %v4215_v30  ;;  %v668_v45 = vadd.f32 %v667_v55, %v4217_v31  ;;  %v803_v54 = vmin.f32 %v739_v1, 6.0 }
 0x1ce   : >> { %v742_v19 = vmax.f32 %v579_v44, 0.0  ;;  %v743_v55 = vmax.f32 %v668_v45, 0.0  ;;  %v887_v61 = vadd.f32 %v886_v21, %v803_v54 }
 0x1d0   : >> { %v806_v0 = vmin.f32 %v742_v19, 6.0  ;;  %v807_v1 = vmin.f32 %v743_v55, 6.0  ;;  %v594_v19 = vadd.f32 %v4229_v58, %v4215_v30  ;;  %v683_v55 = vadd.f32 %v4231_v59, %v4217_v31 }
 0x1d1   : >> { %v4275_v8 = vpop.f32.mrf.mxu2  ;;  %v4277_v9 = vpop.f32.mrf.mxu3  ;;  %v686_v58 = vadd.f32 %v4237_v11, %v4217_v31  ;;  %v602_v11 = vadd.f32 %v4245_v28, %v4215_v30 }
 0x1d2   : >> { %v754_v60 = vmax.f32 %v594_v19, 0.0 }
 0x1d3   : >> { %v581_v62 = vpop.f32.mrf.mxu0  ;;  %v670_v63 = vpop.f32.mrf.mxu1 }
 0x1d4   : >> { %v582_v51 = vadd.f32 %v581_v62, %v4215_v30  ;;  %v671_v15 = vadd.f32 %v670_v63, %v4217_v31  ;;  %v805_v62 = vmin.f32 %v741_v50, 6.0  ;;  %v681_v50 = vadd.f32 %v4225_v47, %v4217_v31 }
 0x1d6   : >> { %v744_v33 = vmax.f32 %v582_v51, 0.0  ;;  %v745_v63 = vmax.f32 %v671_v15, 0.0  ;;  %v858_v51 = vadd.f32 %v857_v6, %v806_v0  ;;  %v599_v0 = vadd.f32 %v4241_v22, %v4215_v30 }
 0x1d7   : >> { %v818_v22 = vmin.f32 %v754_v60, 6.0  ;;  %v612_v60 = vadd.f32 %v4261_v48, %v4215_v30 }
 0x1d8   : >> { %v808_v7 = vmin.f32 %v744_v33, 6.0  ;;  %v752_v33 = vmax.f32 %v592_v14, 0.0  ;;  %v758_v28 = vmax.f32 %v599_v0, 0.0 }
 0x1d9   : >> { %v4289_v24 = vpop.f32.mrf.mxu2  ;;  %v4291_v25 = vpop.f32.mrf.mxu3 }
 0x1da   : >> { %v859_v20 = vadd.f32 %v858_v51, %v808_v7 }
 0x1db   : >> { %v583_v56 = vpop.f32.mrf.mxu0  ;;  %v672_v40 = vpop.f32.mrf.mxu1 }
 0x1dc   : >> { %v584_v26 = vadd.f32 %v583_v56, %v4215_v30  ;;  %v673_v27 = vadd.f32 %v672_v40, %v4217_v31  ;;  %v888_v56 = vadd.f32 %v887_v61, %v805_v62  ;;  %v809_v40 = vmin.f32 %v745_v63, 6.0 }
 0x1dd   : >> { %v753_v63 = vmax.f32 %v681_v50, 0.0  ;;  %v755_v61 = vmax.f32 %v683_v55, 0.0 }
 0x1de   : >> { %v746_v44 = vmax.f32 %v584_v26, 0.0  ;;  %v747_v45 = vmax.f32 %v673_v27, 0.0  ;;  %v889_v15 = vadd.f32 %v888_v56, %v807_v1  ;;  %v688_v1 = vadd.f32 %v4243_v23, %v4217_v31 }
 0x1df   : >> { %v817_v7 = vmin.f32 %v753_v63, 6.0  ;;  %v819_v51 = vmin.f32 %v755_v61, 6.0  ;;  %v604_v23 = vadd.f32 %v4249_v34, %v4215_v30  ;;  %v698_v63 = vadd.f32 %v4259_v43, %v4217_v31 }
 0x1e0   : >> { %v810_v18 = vmin.f32 %v746_v44, 6.0  ;;  %v811_v54 = vmin.f32 %v747_v45, 6.0  ;;  %v890_v21 = vadd.f32 %v889_v15, %v809_v40  ;;  %v691_v40 = vadd.f32 %v4247_v29, %v4217_v31 }
 0x1e1   : >> { %v4301_v16 = vpop.f32.mrf.mxu2  ;;  %v4303_v17 = vpop.f32.mrf.mxu3  ;;  %v693_v15 = vadd.f32 %v4251_v35, %v4217_v31  ;;  %v759_v19 = vmax.f32 %v688_v1, 0.0  ;;  %v701_v61 = vadd.f32 %v4263_v49, %v4217_v31  ;;  %v767_v43 = vmax.f32 %v698_v63, 0.0 }
 0x1e2   : >> { %v891_v59 = vadd.f32 %v890_v21, %v811_v54  ;;  %v761_v21 = vmax.f32 %v691_v40, 0.0  ;;  %v617_v49 = vadd.f32 %v4275_v8, %v4215_v30 }
 0x1e3   : >> { %v586_v36 = vpop.f32.mrf.mxu0  ;;  %v675_v37 = vpop.f32.mrf.mxu1 }
 0x1e4   : >> { %v587_v57 = vadd.f32 %v586_v36, %v4215_v30  ;;  %v676_v41 = vadd.f32 %v675_v37, %v4217_v31  ;;  %v597_v36 = vadd.f32 %v4235_v10, %v4215_v30  ;;  %v860_v37 = vadd.f32 %v859_v20, %v810_v18 }
 0x1e5   : >> { %v816_v10 = vmin.f32 %v752_v33, 6.0  ;;  %v760_v20 = vmax.f32 %v602_v11, 0.0  ;;  %v609_v33 = vadd.f32 %v4257_v42, %v4215_v30  ;;  %v772_v8 = vmax.f32 %v617_v49, 0.0 }
 0x1e6   : >> { %v748_v12 = vmax.f32 %v587_v57, 0.0  ;;  %v749_v13 = vmax.f32 %v676_v41, 0.0 }
 0x1e8   : >> { %v812_v27 = vmin.f32 %v748_v12, 6.0  ;;  %v813_v47 = vmin.f32 %v749_v13, 6.0  ;;  %v756_v12 = vmax.f32 %v597_v36, 0.0  ;;  %v757_v13 = vmax.f32 %v686_v58, 0.0 }
 0x1e9   : >> { %v4327_v18 = vpop.f32.mrf.mxu2  ;;  %v4329_v54 = vpop.f32.mrf.mxu3  ;;  %v822_v36 = vmin.f32 %v758_v28, 6.0  ;;  %v823_v58 = vmin.f32 %v759_v19, 6.0 }
 0x1ea   : >> { %v861_v44 = vadd.f32 %v860_v37, %v812_v27  ;;  %v892_v45 = vadd.f32 %v891_v59, %v813_v47  ;;  %v820_v34 = vmin.f32 %v756_v12, 6.0  ;;  %v821_v27 = vmin.f32 %v757_v13, 6.0 }
 0x1eb   : >> { %v588_v46 = vpop.f32.mrf.mxu0  ;;  %v677_v26 = vpop.f32.mrf.mxu1  ;;  %v706_v13 = vadd.f32 %v4277_v9, %v4217_v31  ;;  %v622_v9 = vadd.f32 %v4301_v16, %v4215_v30  ;;  %v836_v16 = vmin.f32 %v772_v8, 6.0  ;;  %v2771_v8 = vld [vmem:[#allocation9 + $0x70] sm:$0xf] (%p445_p1) }
 0x1ec   : >> { %v589_v32 = vadd.f32 %v588_v46, %v4215_v30  ;;  %v678_v62 = vadd.f32 %v677_v26, %v4217_v31  ;;  %v607_v46 = vadd.f32 %v4253_v38, %v4215_v30  ;;  %v696_v26 = vadd.f32 %v4255_v39, %v4217_v31 }
 0x1ed   : >> { %v824_v38 = vmin.f32 %v760_v20, 6.0  ;;  %v773_v20 = vmax.f32 %v706_v13, 0.0 }
 0x1ee   : >> { %v750_v57 = vmax.f32 %v589_v32, 0.0  ;;  %v751_v41 = vmax.f32 %v678_v62, 0.0  ;;  %v762_v32 = vmax.f32 %v604_v23, 0.0  ;;  %v763_v62 = vmax.f32 %v693_v15, 0.0 }
 0x1ef   : >> { %v765_v39 = vmax.f32 %v696_v26, 0.0  ;;  %v831_v15 = vmin.f32 %v767_v43, 6.0 }
 0x1f0   : >> { %v814_v6 = vmin.f32 %v750_v57, 6.0  ;;  %v815_v56 = vmin.f32 %v751_v41, 6.0  ;;  %v825_v57 = vmin.f32 %v761_v21, 6.0  ;;  %v764_v41 = vmax.f32 %v607_v46, 0.0 }
 0x1f1   : >> { %v826_v42 = vmin.f32 %v762_v32, 6.0  ;;  %v829_v12 = vmin.f32 %v765_v39, 6.0  ;;  %v711_v21 = vadd.f32 %v4303_v17, %v4217_v31 }
 0x1f2   : >> { %v862_v14 = vadd.f32 %v861_v44, %v814_v6  ;;  %v893_v50 = vadd.f32 %v892_v45, %v815_v56  ;;  %v827_v44 = vmin.f32 %v763_v62, 6.0  ;;  %v766_v45 = vmax.f32 %v609_v33, 0.0  ;;  %v626_v6 = vpop.f32.mrf.mxu2  ;;  %v715_v56 = vpop.f32.mrf.mxu3 }
 0x1f3   : >> { %v828_v48 = vmin.f32 %v764_v41, 6.0  ;;  %v777_v17 = vmax.f32 %v711_v21, 0.0  ;;  %v716_v41 = vadd.f32 %v715_v56, %v4217_v31 }
 0x1f4   : >> { %v863_v55 = vadd.f32 %v862_v14, %v816_v10  ;;  %v894_v29 = vadd.f32 %v893_v50, %v817_v7  ;;  %v614_v10 = vadd.f32 %v4265_v52, %v4215_v30  ;;  %v703_v7 = vadd.f32 %v4267_v53, %v4217_v31 }
 0x1f5   : >> { %v768_v14 = vmax.f32 %v612_v60, 0.0  ;;  %v769_v50 = vmax.f32 %v701_v61, 0.0  ;;  %v830_v23 = vmin.f32 %v766_v45, 6.0  ;;  %v619_v52 = vadd.f32 %v4289_v24, %v4215_v30 }
 0x1f6   : >> { %v864_v47 = vadd.f32 %v863_v55, %v818_v22  ;;  %v895_v35 = vadd.f32 %v894_v29, %v819_v51  ;;  %v708_v53 = vadd.f32 %v4291_v25, %v4217_v31  ;;  %v770_v28 = vmax.f32 %v614_v10, 0.0 }
 0x1f7   : >> { %v771_v19 = vmax.f32 %v703_v7, 0.0  ;;  %v832_v46 = vmin.f32 %v768_v14, 6.0  ;;  %v833_v26 = vmin.f32 %v769_v50, 6.0  ;;  %v774_v24 = vmax.f32 %v619_v52, 0.0  ;;  %v912_v52 = vld [vmem:[%s911_s26] sm:$0xff] }
 0x1f8   : >> { %v865_v37 = vadd.f32 %v864_v47, %v820_v34  ;;  %v896_v59 = vadd.f32 %v895_v35, %v821_v27  ;;  %v775_v47 = vmax.f32 %v708_v53, 0.0  ;;  %v624_v25 = vadd.f32 %v4327_v18, %v4215_v30  ;;  %v913_v53 = vld [vmem:[%s911_s26 + $0x8] sm:$0xff] }
 0x1f9   : >> { %v713_v35 = vadd.f32 %v4329_v54, %v4217_v31  ;;  %v834_v32 = vmin.f32 %v770_v28, 6.0  ;;  %v835_v62 = vmin.f32 %v771_v19, 6.0  ;;  %v838_v18 = vmin.f32 %v774_v24, 6.0 }
 0x1fa   : >> { %v866_v0 = vadd.f32 %v865_v37, %v822_v36  ;;  %v897_v1 = vadd.f32 %v896_v59, %v823_v58  ;;  %v837_v36 = vmin.f32 %v773_v20, 6.0  ;;  %v776_v58 = vmax.f32 %v622_v9, 0.0  ;;  %v628_v37 = vpop.f32.mrf.mxu2  ;;  %v717_v59 = vpop.f32.mrf.mxu3  ;;  %v3438_v20 = vld [vmem:[#allocation9 + $0x74] sm:$0xf0] (%p445_p1)  ;;  %v2835_v9 = vld [vmem:[#allocation9 + $0xf0] sm:$0xf] (%p445_p1) }
 0x1fb   : >> { %v839_v60 = vmin.f32 %v775_v47, 6.0  ;;  %v778_v54 = vmax.f32 %v624_v25, 0.0  ;;  %v779_v61 = vmax.f32 %v713_v35, 0.0  ;;  %v841_v43 = vmin.f32 %v777_v17, 6.0  ;;  %v3453_v47 = vld [vmem:[#allocation9 + $0xf4] sm:$0xf] (%p445_p1) }
 0x1fc   : >> { %v867_v11 = vadd.f32 %v866_v0, %v824_v38  ;;  %v898_v40 = vadd.f32 %v897_v1, %v825_v57  ;;  %v627_v38 = vadd.f32 %v626_v6, %v4215_v30  ;;  %v840_v45 = vmin.f32 %v776_v58, 6.0  ;;  %v2837_v25 = vld [vmem:[#allocation9 + $0xf8] sm:$0xf0] (%p445_p1)  ;;  %v2763_v35 = vld [vmem:[#allocation9 + $0x60] sm:$0xf] (%p445_p1) }
 0x1fd   : >> { %v781_v6 = vmax.f32 %v716_v41, 0.0  ;;  %v843_v56 = vmin.f32 %v779_v61, 6.0  ;;  %v2772_v21 = vor.u32 (%p445_p1), %v3438_v20, %v2771_v8  ;;  %v2829_v58 = vld [vmem:[#allocation9 + $0xe8] sm:$0xf0] (%p445_p1)  ;;  %v2755_v17 = vld [vmem:[#allocation9 + $0x50] sm:$0xf] (%p445_p1) }
 0x1fe   : >> { %v868_v22 = vadd.f32 %v867_v11, %v826_v42  ;;  %v899_v51 = vadd.f32 %v898_v40, %v827_v44  ;;  %v629_v42 = vadd.f32 %v628_v37, %v4215_v30  ;;  %v718_v44 = vadd.f32 %v717_v59, %v4217_v31  ;;  %v3434_v37 = vld [vmem:[#allocation9 + $0x54] sm:$0xf0] (%p445_p1)  ;;  %v3433_v41 = vld [vmem:[#allocation9 + $0x54] sm:$0xf] (%p445_p1)  ;;  %v3427_v8 = vld [vmem:[#allocation9 + $0x24] sm:$0xf] (%p445_p1) }
 0x1ff   : >> { %v780_v10 = vmax.f32 %v627_v38, 0.0  ;;  %v842_v40 = vmin.f32 %v778_v54, 6.0  ;;  %1240 = vmatpush.bf16.msra.mxu0 (%p445_p1), %v2772_v21  ;;  %v2832_v59 = vor.u32 (%p445_p1), %v3451_v5, %v2829_v58  ;;  %v2819_v38 = vld [vmem:[#allocation9 + $0xd0] sm:$0xf] (%p445_p1)  ;;  %v2821_v54 = vld [vmem:[#allocation9 + $0xd8] sm:$0xf0] (%p445_p1) }
 0x200   : >> { %v869_v55 = vadd.f32 %v868_v22, %v828_v48  ;;  %v900_v29 = vadd.f32 %v899_v51, %v829_v12  ;;  %v782_v49 = vmax.f32 %v629_v42, 0.0  ;;  %v783_v13 = vmax.f32 %v718_v44, 0.0  ;;  %v3432_v42 = vld [vmem:[#allocation9 + $0x44] sm:$0xf0] (%p445_p1)  ;;  %v2811_v44 = vld [vmem:[#allocation9 + $0xc0] sm:$0xf] (%p445_p1) }
 0x201   : >> { %v844_v14 = vmin.f32 %v780_v10, 6.0  ;;  %v845_v22 = vmin.f32 %v781_v6, 6.0  ;;  %v3431_v10 = vld [vmem:[#allocation9 + $0x44] sm:$0xf] (%p445_p1)  ;;  %v2733_v20 = vld [vmem:[#allocation9 + $0x28] sm:$0xf0] (%p445_p1) }
 0x202   : >> { %v870_v34 = vadd.f32 %v869_v55, %v830_v23  ;;  %v901_v27 = vadd.f32 %v900_v29, %v831_v15  ;;  %v846_v31 = vmin.f32 %v782_v49, 6.0  ;;  %v847_v15 = vmin.f32 %v783_v13, 6.0  ;;  %v3447_v6 = vld [vmem:[#allocation9 + $0xc4] sm:$0xf] (%p445_p1)  ;;  %v3430_v49 = vld [vmem:[#allocation9 + $0x34] sm:$0xf0] (%p445_p1) }
 0x203   : > { %v2803_v13 = vld [vmem:[#allocation9 + $0xb0] sm:$0xf] (%p445_p1)  ;;  %v2797_v21 = vld [vmem:[#allocation9 + $0xa8] sm:$0xf0] (%p445_p1)  ;;  %v3440_v58 = vld [vmem:[#allocation9 + $0x84] sm:$0xf0] (%p445_p1) }
 0x204   : >> { %v871_v33 = vadd.f32 %v870_v34, %v832_v46  ;;  %v902_v63 = vadd.f32 %v901_v27, %v833_v26  ;;  %v3454_v46 = vld [vmem:[#allocation9 + $0xf4] sm:$0xf0] (%p445_p1)  ;;  %v3437_v26 = vld [vmem:[#allocation9 + $0x74] sm:$0xf] (%p445_p1)  ;;  %v2773_v34 = vld [vmem:[#allocation9 + $0x78] sm:$0xf0] (%p445_p1) }
 0x205   : > { %v2836_v27 = vor.u32 (%p445_p1), %v3454_v46, %v2835_v9  ;;  %v2776_v24 = vor.u32 (%p445_p1), %v3437_v26, %v2773_v34  ;;  %v3443_v9 = vld [vmem:[#allocation9 + $0xa4] sm:$0xf] (%p445_p1)  ;;  %v2736_v34 = vor.u32 (%p445_p1), %v3427_v8, %v2733_v20  ;;  %v3465_v8 = vld [vmem:[#allocation9 + $0x154] sm:$0xf] (%p445_p1)  ;;  %v2885_v20 = vld [vmem:[#allocation9 + $0x158] sm:$0xf0] (%p445_p1) }
 0x206   : >> { %v872_v57 = vadd.f32 %v871_v33, %v834_v32  ;;  %v903_v39 = vadd.f32 %v902_v63, %v835_v62  ;;  %v2840_v32 = vor.u32 (%p445_p1), %v3453_v47, %v2837_v25  ;;  %v3436_v62 = vld [vmem:[#allocation9 + $0x64] sm:$0xf0] (%p445_p1)  ;;  %v2827_v33 = vld [vmem:[#allocation9 + $0xe0] sm:$0xf] (%p445_p1)  ;;  %v2787_v47 = vld [vmem:[#allocation9 + $0x90] sm:$0xf] (%p445_p1)  ;;  %v2800_v25 = vor.u32 (%p445_p1), %v3443_v9, %v2797_v21 }
 0x207   : > { %v3452_v63 = vld [vmem:[#allocation9 + $0xe4] sm:$0xf0] (%p445_p1)  ;;  %1253 = vmatpush.bf16.msra.mxu1 (%p445_p1), %v2836_v27  ;;  %1266 = vmatpush.bf16.msra.mxu2 (%p445_p1), %v2776_v24  ;;  %v2723_v27 = vld [vmem:[#allocation9 + $0x10] sm:$0xf] (%p445_p1)  ;;  %v3426_v24 = vld [vmem:[#allocation9 + $0x14] sm:$0xf0] (%p445_p1) }
 0x208   : >> { %v873_v0 = vadd.f32 %v872_v57, %v836_v16  ;;  %v904_v1 = vadd.f32 %v903_v39, %v837_v36  ;;  %v2764_v16 = vor.u32 (%p445_p1), %v3436_v62, %v2763_v35  ;;  %v2828_v2 = vor.u32 (%p445_p1), %v3452_v63, %v2827_v33  ;;  %1279 = vmatpush.bf16.msra.mxu3 (%p445_p1), %v2840_v32  ;;  %v3450_v57 = vld [vmem:[#allocation9 + $0xd4] sm:$0xf0] (%p445_p1)  ;;  %v3425_v32 = vld [vmem:[#allocation9 + $0x14] sm:$0xf] (%p445_p1)  ;;  %v2725_v62 = vld [vmem:[#allocation9 + $0x18] sm:$0xf0] (%p445_p1) }
 0x209   : > { %v2768_v36 = vor.u32 (%p445_p1), %v3435_v3, %v2765_v4  ;;  %v2756_v39 = vor.u32 (%p445_p1), %v3434_v37, %v2755_v17  ;;  %v2820_v61 = vor.u32 (%p445_p1), %v3450_v57, %v2819_v38  ;;  %v3442_v35 = vld [vmem:[#allocation9 + $0x94] sm:$0xf0] (%p445_p1)  ;;  %v3441_v33 = vld [vmem:[#allocation9 + $0x94] sm:$0xf] (%p445_p1)  ;;  %v2789_v63 = vld [vmem:[#allocation9 + $0x98] sm:$0xf0] (%p445_p1)  ;;  %v2728_v5 = vor.u32 (%p445_p1), %v3425_v32, %v2725_v62 }
 0x20a   : >> { %v874_v7 = vadd.f32 %v873_v0, %v838_v18  ;;  %v905_v11 = vadd.f32 %v904_v1, %v839_v60  ;;  %1241 = vmatpush.bf16.msra.mxu0 (%p445_p1), %v2764_v16  ;;  %v2757_v18 = vld [vmem:[#allocation9 + $0x58] sm:$0xf0] (%p445_p1)  ;;  %v3449_v60 = vld [vmem:[#allocation9 + $0xd4] sm:$0xf] (%p445_p1)  ;;  %v2747_v1 = vld [vmem:[#allocation9 + $0x40] sm:$0xf] (%p445_p1)  ;;  %v2724_v16 = vor.u32 (%p445_p1), %v3426_v24, %v2723_v27  ;;  %v2788_v4 = vor.u32 (%p445_p1), %v3442_v35, %v2787_v47 }
 0x20b   : > { %1254 = vmatpush.bf16.msra.mxu1 (%p445_p1), %v2828_v2  ;;  %1267 = vmatpush.bf16.msra.mxu2 (%p445_p1), %v2768_v36  ;;  %v2760_v0 = vor.u32 (%p445_p1), %v3433_v41, %v2757_v18  ;;  %v2715_v2 = vld [vmem:[#allocation9] sm:$0xf] (%p445_p1)  ;;  %v3424_v3 = vld [vmem:[#allocation9 + $0x4] sm:$0xf0] (%p445_p1)  ;;  %v3423_v17 = vld [vmem:[#allocation9 + $0x4] sm:$0xf] (%p445_p1)  ;;  %v2792_v37 = vor.u32 (%p445_p1), %v3441_v33, %v2789_v63 }
 0x20c   : >> { %v875_v48 = vadd.f32 %v874_v7, %v840_v45  ;;  %v906_v12 = vadd.f32 %v905_v11, %v841_v43  ;;  %1280 = vmatpush.bf16.msra.mxu3 (%p445_p1), %v2832_v59  ;;  %v2824_v45 = vor.u32 (%p445_p1), %v3449_v60, %v2821_v54  ;;  %v3448_v43 = vld [vmem:[#allocation9 + $0xc4] sm:$0xf0] (%p445_p1)  ;;  %v2749_v7 = vld [vmem:[#allocation9 + $0x48] sm:$0xf0] (%p445_p1)  ;;  %v2779_v36 = vld [vmem:[#allocation9 + $0x80] sm:$0xf] (%p445_p1)  ;;  %v2716_v60 = vor.u32 (%p445_p1), %v3424_v3, %v2715_v2 }
 0x20d   : > { %v2813_v11 = vld [vmem:[#allocation9 + $0xc8] sm:$0xf0] (%p445_p1)  ;;  %v3439_v38 = vld [vmem:[#allocation9 + $0x84] sm:$0xf] (%p445_p1)  ;;  %v2899_v41 = vld [vmem:[#allocation9 + $0x170] sm:$0xf] (%p445_p1) }
 0x20e   : >> { %v876_v50 = vadd.f32 %v875_v48, %v842_v40  ;;  %v907_v51 = vadd.f32 %v906_v12, %v843_v56  ;;  %1242 = vmatpush.bf16.msra.mxu0 (%p445_p1), %v2756_v39  ;;  %v2748_v40 = vor.u32 (%p445_p1), %v3432_v42, %v2747_v1  ;;  %v2812_v56 = vor.u32 (%p445_p1), %v3448_v43, %v2811_v44  ;;  %v2739_v12 = vld [vmem:[#allocation9 + $0x30] sm:$0xf] (%p445_p1)  ;;  %v2717_v59 = vld [vmem:[#allocation9 + $0x8] sm:$0xf0] (%p445_p1)  ;;  %v3470_v39 = vld [vmem:[#allocation9 + $0x174] sm:$0xf0] (%p445_p1) }
 0x20f   : > { %1255 = vmatpush.bf16.msra.mxu1 (%p445_p1), %v2820_v61  ;;  %1268 = vmatpush.bf16.msra.mxu2 (%p445_p1), %v2760_v0  ;;  %v2752_v48 = vor.u32 (%p445_p1), %v3431_v10, %v2749_v7  ;;  %v2781_v57 = vld [vmem:[#allocation9 + $0x88] sm:$0xf0] (%p445_p1)  ;;  %v2963_v18 = vld [vmem:[#allocation9 + $0x1f0] sm:$0xf] (%p445_p1)  ;;  %v3486_v54 = vld [vmem:[#allocation9 + $0x1f4] sm:$0xf0] (%p445_p1)  ;;  %v2780_v1 = vor.u32 (%p445_p1), %v3440_v58, %v2779_v36  ;;  %v2720_v42 = vor.u32 (%p445_p1), %v3423_v17, %v2717_v59 }
 0x210   : >> { %v877_v30 = vadd.f32 %v876_v50, %v844_v14  ;;  %v908_v23 = vadd.f32 %v907_v51, %v845_v22  ;;  %1281 = vmatpush.bf16.msra.mxu3 (%p445_p1), %v2824_v45  ;;  %v2816_v14 = vor.u32 (%p445_p1), %v3447_v6, %v2813_v11  ;;  %v3446_v50 = vld [vmem:[#allocation9 + $0xb4] sm:$0xf0] (%p445_p1)  ;;  %v3429_v22 = vld [vmem:[#allocation9 + $0x34] sm:$0xf] (%p445_p1)  ;;  %v2741_v51 = vld [vmem:[#allocation9 + $0x38] sm:$0xf0] (%p445_p1)  ;;  %v2784_v43 = vor.u32 (%p445_p1), %v3439_v38, %v2781_v57 }
 0x211   : > { %v3469_v61 = vld [vmem:[#allocation9 + $0x174] sm:$0xf] (%p445_p1)  ;;  %v2901_v0 = vld [vmem:[#allocation9 + $0x178] sm:$0xf0] (%p445_p1)  ;;  %v2900_v10 = vor.u32 (%p445_p1), %v3470_v39, %v2899_v41  ;;  %v2891_v7 = vld [vmem:[#allocation9 + $0x160] sm:$0xf] (%p445_p1)  ;;  %v2964_v6 = vor.u32 (%p445_p1), %v3486_v54, %v2963_v18 }
 0x212   : >> { %v878_v28 = vadd.f32 %v877_v30, %v846_v31  ;;  %v909_v19 = vadd.f32 %v908_v23, %v847_v15  ;;  %v3445_v30 = vld [vmem:[#allocation9 + $0xb4] sm:$0xf] (%p445_p1)  ;;  %v2805_v23 = vld [vmem:[#allocation9 + $0xb8] sm:$0xf0] (%p445_p1)  ;;  %1243 = vmatpush.bf16.msra.mxu0 (%p445_p1), %v2748_v40  ;;  %v2740_v31 = vor.u32 (%p445_p1), %v3430_v49, %v2739_v12  ;;  %v2804_v15 = vor.u32 (%p445_p1), %v3446_v50, %v2803_v13  ;;  %v3468_v40 = vld [vmem:[#allocation9 + $0x164] sm:$0xf0] (%p445_p1) }
 0x213   : > { %447 = sbr.rel (!%p445_p1) target bundleno = 72 (0x48), region = 143  ;;  %1256 = vmatpush.bf16.msra.mxu1 (%p445_p1), %v2812_v56  ;;  %1269 = vmatpush.bf16.msra.mxu2 (%p445_p1), %v2752_v48  ;;  %v3485_v44 = vld [vmem:[#allocation9 + $0x1f4] sm:$0xf] (%p445_p1)  ;;  %v2965_v45 = vld [vmem:[#allocation9 + $0x1f8] sm:$0xf0] (%p445_p1)  ;;  %v2904_v11 = vor.u32 (%p445_p1), %v3469_v61, %v2901_v0 }
 0x214   : >> { %v914_v55 = vadd.f32 %v912_v52, %v878_v28  ;;  %v915_v29 = vadd.f32 %v913_v53, %v909_v19  ;;  %v2744_v52 = vor.u32 (%p445_p1), %v3429_v22, %v2741_v51  ;;  %v2731_v53 = vld [vmem:[#allocation9 + $0x20] sm:$0xf] (%p445_p1)  ;;  %v3428_v28 = vld [vmem:[#allocation9 + $0x24] sm:$0xf0] (%p445_p1)  ;;  %1282 = vmatpush.bf16.msra.mxu3 (%p445_p1), %v2816_v14  ;;  %v2968_v12 = vor.u32 (%p445_p1), %v3485_v44, %v2965_v45  ;;  %v3467_v49 = vld [vmem:[#allocation9 + $0x164] sm:$0xf] (%p445_p1) }
 0x215   : > { %v2795_v19 = vld [vmem:[#allocation9 + $0xa0] sm:$0xf] (%p445_p1)  ;;  %v2732_v46 = vor.u32 (%p445_p1), %v3428_v28, %v2731_v53  ;;  %v3484_v48 = vld [vmem:[#allocation9 + $0x1e4] sm:$0xf0] (%p445_p1)  ;;  %v2893_v13 = vld [vmem:[#allocation9 + $0x168] sm:$0xf0] (%p445_p1) }
 0x216   : >> { %916 = vst [vmem:[%s911_s26] sm:$0xff] %v914_v55  ;;  %v2808_v55 = vor.u32 (%p445_p1), %v3445_v30, %v2805_v23  ;;  %1244 = vmatpush.bf16.msra.mxu0 (%p445_p1), %v2740_v31  ;;  %v2955_v56 = vld [vmem:[#allocation9 + $0x1e0] sm:$0xf] (%p445_p1)  ;;  %v3483_v14 = vld [vmem:[#allocation9 + $0x1e4] sm:$0xf] (%p445_p1)  ;;  %v2957_v50 = vld [vmem:[#allocation9 + $0x1e8] sm:$0xf0] (%p445_p1)  ;;  %v2892_v30 = vor.u32 (%p445_p1), %v3468_v40, %v2891_v7 }
 0x217   : >> { %917 = vst [vmem:[%s911_s26 + $0x8] sm:$0xff] %v915_v29  ;;  %v3444_v29 = vld [vmem:[#allocation9 + $0xa4] sm:$0xf0] (%p445_p1)  ;;  %1257 = vmatpush.bf16.msra.mxu1 (%p445_p1), %v2804_v15  ;;  %1270 = vmatpush.bf16.msra.mxu2 (%p445_p1), %v2744_v52  ;;  %v2956_v15 = vor.u32 (%p445_p1), %v3484_v48, %v2955_v56  ;;  %v2896_v52 = vor.u32 (%p445_p1), %v3467_v49, %v2893_v13  ;;  %v2883_v53 = vld [vmem:[#allocation9 + $0x150] sm:$0xf] (%p445_p1) }
 0x218   : > { %v2796_v26 = vor.u32 %v3444_v29, %v2795_v19  ;;  %1283 = vmatpush.bf16.msra.mxu3 %v2808_v55  ;;  %v3466_v28 = vld [vmem:[#allocation9 + $0x154] sm:$0xf0]  ;;  %v2947_v19 = vld [vmem:[#allocation9 + $0x1d0] sm:$0xf]  ;;  %v2960_v55 = vor.u32 %v3483_v14, %v2957_v50  ;;  %v2875_v35 = vld [vmem:[#allocation9 + $0x140] sm:$0xf] }
 0x219   : > { %v3482_v29 = vld [vmem:[#allocation9 + $0x1d4] sm:$0xf0]  ;;  %v3464_v32 = vld [vmem:[#allocation9 + $0x144] sm:$0xf0]  ;;  %v2939_v62 = vld [vmem:[#allocation9 + $0x1c0] sm:$0xf] }
 0x21a   : > { %1245 = vmatpush.bf16.msra.mxu0 %v2732_v46  ;;  %v3481_v46 = vld [vmem:[#allocation9 + $0x1d4] sm:$0xf]  ;;  %v2948_v47 = vor.u32 %v3482_v29, %v2947_v19  ;;  %v3480_v63 = vld [vmem:[#allocation9 + $0x1c4] sm:$0xf0]  ;;  %v2877_v2 = vld [vmem:[#allocation9 + $0x148] sm:$0xf0]  ;;  %v2876_v58 = vor.u32 %v3464_v32, %v2875_v35 }
 0x21b   : > { %1258 = vmatpush.bf16.msra.mxu1 %v2796_v26  ;;  %1271 = vmatpush.bf16.msra.mxu2 %v2736_v34  ;;  %v2949_v26 = vld [vmem:[#allocation9 + $0x1d8] sm:$0xf0]  ;;  %v2884_v34 = vor.u32 %v3466_v28, %v2883_v53  ;;  %v2941_v36 = vld [vmem:[#allocation9 + $0x1c8] sm:$0xf0]  ;;  %v2940_v59 = vor.u32 %v3480_v63, %v2939_v62  ;;  %v2867_v57 = vld [vmem:[#allocation9 + $0x130] sm:$0xf] }
 0x21c   : > { %1284 = vmatpush.bf16.msra.mxu3 %v2800_v25  ;;  %v2888_v25 = vor.u32 %v3465_v8, %v2885_v20  ;;  %v2952_v33 = vor.u32 %v3481_v46, %v2949_v26  ;;  %v3462_v41 = vld [vmem:[#allocation9 + $0x134] sm:$0xf0]  ;;  %v2931_v39 = vld [vmem:[#allocation9 + $0x1b0] sm:$0xf]  ;;  %v3461_v0 = vld [vmem:[#allocation9 + $0x134] sm:$0xf] }
 0x21d   : > { %v3478_v61 = vld [vmem:[#allocation9 + $0x1b4] sm:$0xf0]  ;;  %v2933_v44 = vld [vmem:[#allocation9 + $0x1b8] sm:$0xf0]  ;;  %v2859_v7 = vld [vmem:[#allocation9 + $0x120] sm:$0xf] }
 0x21e   : > { %1246 = vmatpush.bf16.msra.mxu0 %v2724_v16  ;;  %v921_v22 = vld [vmem:[#allocation2] sm:$0xff]  ;;  %v922_v51 = vld [vmem:[#allocation2 + $0x8] sm:$0xff]  ;;  %v3474_v8 = vld [vmem:[#allocation9 + $0x194] sm:$0xf0] }
 0x21f   : > { %1259 = vmatpush.bf16.msra.mxu1 %v2788_v4  ;;  %1272 = vmatpush.bf16.msra.mxu2 %v2728_v5  ;;  %v931_v23 = vrot.slane %v921_v22, 4  ;;  %v937_v31 = vrot.slane %v922_v51, 4  ;;  %v3463_v16 = vld [vmem:[#allocation9 + $0x144] sm:$0xf]  ;;  %v2923_v56 = vld [vmem:[#allocation9 + $0x1a0] sm:$0xf] }
 0x220   : > { %1285 = vmatpush.bf16.msra.mxu3 %v2792_v37  ;;  %v3479_v5 = vld [vmem:[#allocation9 + $0x1c4] sm:$0xf]  ;;  %v2880_v38 = vor.u32 %v3463_v16, %v2877_v2  ;;  %v3476_v48 = vld [vmem:[#allocation9 + $0x1a4] sm:$0xf0]  ;;  %v2861_v50 = vld [vmem:[#allocation9 + $0x128] sm:$0xf0] }
 0x221   : > { %v932_v9 = vadd.f32 %v931_v23, %v921_v22  ;;  %v938_v21 = vadd.f32 %v937_v31, %v922_v51  ;;  %v2944_v18 = vor.u32 %v3479_v5, %v2941_v36  ;;  %v923_v22 = vld [vmem:[#allocation2 + $0x10] sm:$0xff]  ;;  %v924_v51 = vld [vmem:[#allocation2 + $0x18] sm:$0xff]  ;;  %v2925_v23 = vld [vmem:[#allocation9 + $0x1a8] sm:$0xf0]  ;;  %v2924_v19 = vor.u32 %v3476_v48, %v2923_v56 }
 0x222   : > { %1247 = vmatpush.bf16.msra.mxu0 %v2716_v60  ;;  %v943_v31 = vrot.slane %v923_v22, 4  ;;  %v2851_v28 = vld [vmem:[#allocation9 + $0x110] sm:$0xf]  ;;  %v3456_v63 = vld [vmem:[#allocation9 + $0x104] sm:$0xf0] }
 0x223   : > { %1260 = vmatpush.bf16.msra.mxu1 %v2780_v1  ;;  %1273 = vmatpush.bf16.msra.mxu2 %v2720_v42  ;;  %v933_v27 = vrot.slane %v932_v9, 2  ;;  %v939_v24 = vrot.slane %v938_v21, 2  ;;  %v2869_v1 = vld [vmem:[#allocation9 + $0x138] sm:$0xf0]  ;;  %v3477_v42 = vld [vmem:[#allocation9 + $0x1b4] sm:$0xf] }
 0x224   : > { %1286 = vmatpush.bf16.msra.mxu3 %v2784_v43  ;;  %v2872_v40 = vor.u32 %v3461_v0, %v2869_v1  ;;  %v2936_v14 = vor.u32 %v3477_v42, %v2933_v44  ;;  %v2915_v29 = vld [vmem:[#allocation9 + $0x190] sm:$0xf]  ;;  %v944_v20 = vadd.f32 %v943_v31, %v923_v22  ;;  %v2907_v2 = vld [vmem:[#allocation9 + $0x180] sm:$0xf]  ;;  %v3501_v0 = vld [vmem:[#allocation9 + $0x274] sm:$0xf] }
 0x225   : > { %v934_v3 = vadd.f32 %v933_v27, %v932_v9  ;;  %v940_v4 = vadd.f32 %v939_v24, %v938_v21  ;;  %v3457_v27 = vld [vmem:[#allocation9 + $0x114] sm:$0xf]  ;;  %v2853_v24 = vld [vmem:[#allocation9 + $0x118] sm:$0xf0]  ;;  %v2916_v16 = vor.u32 %v3474_v8, %v2915_v29  ;;  %v3500_v22 = vld [vmem:[#allocation9 + $0x264] sm:$0xf0] }
 0x226   : > { %1497 = vmatpush.bf16.msrb.mxu0 %v2900_v10  ;;  %v2868_v10 = vor.u32 %v3462_v41, %v2867_v57  ;;  %v945_v35 = vrot.slane %v944_v20, 2  ;;  %v3027_v57 = vld [vmem:[#allocation9 + $0x270] sm:$0xf]  ;;  %v3502_v41 = vld [vmem:[#allocation9 + $0x274] sm:$0xf0] }
 0x227   : > { %1510 = vmatpush.bf16.msrb.mxu1 %v2964_v6  ;;  %1523 = vmatpush.bf16.msrb.mxu2 %v2904_v11  ;;  %v935_v17 = vrot.slane %v934_v3, 1  ;;  %v941_v37 = vrot.slane %v940_v4, 1  ;;  %v3460_v6 = vld [vmem:[#allocation9 + $0x124] sm:$0xf0]  ;;  %v2932_v11 = vor.u32 %v3478_v61, %v2931_v39  ;;  %v3518_v61 = vld [vmem:[#allocation9 + $0x2f4] sm:$0xf0]  ;;  %v3028_v56 = vor.u32 %v3502_v41, %v3027_v57 }
 0x228   : > { %1536 = vmatpush.bf16.msrb.mxu3 %v2968_v12  ;;  %v3459_v12 = vld [vmem:[#allocation9 + $0x124] sm:$0xf]  ;;  %v2860_v53 = vor.u32 %v3460_v6, %v2859_v7  ;;  %v946_v5 = vadd.f32 %v945_v35, %v944_v20  ;;  %v3029_v42 = vld [vmem:[#allocation9 + $0x278] sm:$0xf0]  ;;  %v3517_v44 = vld [vmem:[#allocation9 + $0x2f4] sm:$0xf] }
 0x229   : > { %v936_v60 = vadd.f32 %v935_v17, %v934_v3  ;;  %v942_v54 = vadd.f32 %v941_v37, %v940_v4  ;;  %v2864_v26 = vor.u32 %v3459_v12, %v2861_v50  ;;  %v3472_v3 = vld [vmem:[#allocation9 + $0x184] sm:$0xf0]  ;;  %v3455_v4 = vld [vmem:[#allocation9 + $0x104] sm:$0xf]  ;;  %v2845_v37 = vld [vmem:[#allocation9 + $0x108] sm:$0xf0] }
 0x22a   : > { %1498 = vmatpush.bf16.msrb.mxu0 %v2892_v30  ;;  %v3475_v30 = vld [vmem:[#allocation9 + $0x1a4] sm:$0xf]  ;;  %v947_v39 = vrot.slane %v946_v5, 1  ;;  %v2908_v1 = vor.u32 %v3472_v3, %v2907_v2  ;;  %v3011_v8 = vld [vmem:[#allocation9 + $0x250] sm:$0xf] }
 0x22b   : > { %1511 = vmatpush.bf16.msrb.mxu1 %v2956_v15  ;;  %1524 = vmatpush.bf16.msrb.mxu2 %v2896_v52  ;;  %v4371_v45 = vmul.f32 0.00390625, %v936_v60  ;;  %v4373_v43 = vmul.f32 0.00390625, %v942_v54  ;;  %v949_v15 = vrot.slane %v924_v51, 4  ;;  %v3091_v54 = vld [vmem:[#allocation9 + $0x2f0] sm:$0xf] }
 0x22c   : > { %1537 = vmatpush.bf16.msrb.mxu3 %v2960_v55  ;;  %v3458_v55 = vld [vmem:[#allocation9 + $0x114] sm:$0xf0]  ;;  %v948_v7 = vadd.f32 %v947_v39, %v946_v5  ;;  %v3092_v48 = vor.u32 %v3518_v61, %v3091_v54  ;;  %v3077_v35 = vld [vmem:[#allocation9 + $0x2d8] sm:$0xf0]  ;;  %v3067_v2 = vld [vmem:[#allocation9 + $0x2c0] sm:$0xf] }
 0x22d   : > { %v1027_v49 = vmax.f32 %v4371_v45, 0.0  ;;  %v1028_v13 = vmax.f32 %v4373_v43, 0.0  ;;  %v950_v9 = vadd.f32 %v949_v15, %v924_v51  ;;  %v2852_v62 = vor.u32 %v3458_v55, %v2851_v28  ;;  %v3083_v51 = vld [vmem:[#allocation9 + $0x2e0] sm:$0xf]  ;;  %v3499_v15 = vld [vmem:[#allocation9 + $0x264] sm:$0xf] }
 0x22e   : > { %1499 = vmatpush.bf16.msrb.mxu0 %v2884_v34  ;;  %v2928_v34 = vor.u32 %v3475_v30, %v2925_v23  ;;  %v4377_v12 = vmul.f32 0.00390625, %v948_v7  ;;  %v3516_v30 = vld [vmem:[#allocation9 + $0x2e4] sm:$0xf0]  ;;  %v3085_v28 = vld [vmem:[#allocation9 + $0x2e8] sm:$0xf0] }
 0x22f   : > { %1512 = vmatpush.bf16.msrb.mxu1 %v2948_v47  ;;  %1525 = vmatpush.bf16.msrb.mxu2 %v2888_v25  ;;  %v1037_v52 = vpack.c.bf16 %v1028_v13, %v1027_v49  ;;  %v3473_v47 = vld [vmem:[#allocation9 + $0x194] sm:$0xf]  ;;  %v2917_v25 = vld [vmem:[#allocation9 + $0x198] sm:$0xf0]  ;;  %v951_v32 = vrot.slane %v950_v9, 2  ;;  %v3084_v29 = vor.u32 %v3516_v30, %v3083_v51  ;;  %v926_v39 = vld [vmem:[#allocation2 + $0x28] sm:$0xff] }
 0x230   : > { %1538 = vmatpush.bf16.msrb.mxu3 %v2952_v33  ;;  %v2843_v33 = vld [vmem:[#allocation9 + $0x100] sm:$0xf]  ;;  %v2920_v17 = vor.u32 %v3473_v47, %v2917_v25  ;;  %v1029_v23 = vmax.f32 %v4377_v12, 0.0  ;;  %v3498_v20 = vld [vmem:[#allocation9 + $0x254] sm:$0xf0]  ;;  %v961_v61 = vrot.slane %v926_v39, 4 }
 0x231   : > { %v1076_v21 = vperm.slane %v1037_v52, 0  ;;  %v1077_v46 = vperm.slane %v1037_v52, 4  ;;  %v952_v36 = vadd.f32 %v951_v32, %v950_v9  ;;  %v2844_v60 = vor.u32 %v3456_v63, %v2843_v33  ;;  %v3019_v13 = vld [vmem:[#allocation9 + $0x260] sm:$0xf]  ;;  %v3021_v52 = vld [vmem:[#allocation9 + $0x268] sm:$0xf0] }
 0x232   : > { %1500 = vmatpush.bf16.msrb.mxu0 %v2876_v58  ;;  %v2856_v58 = vor.u32 %v3457_v27, %v2853_v24  ;;  %v3020_v55 = vor.u32 %v3500_v22, %v3019_v13  ;;  %v3075_v9 = vld [vmem:[#allocation9 + $0x2d0] sm:$0xf]  ;;  %v3497_v24 = vld [vmem:[#allocation9 + $0x254] sm:$0xf]  ;;  %v3013_v47 = vld [vmem:[#allocation9 + $0x258] sm:$0xf0]  ;;  %v3012_v32 = vor.u32 %v3498_v20, %v3011_v8 }
 0x233   : > { %1513 = vmatpush.bf16.msrb.mxu1 %v2940_v59  ;;  %1526 = vmatpush.bf16.msrb.mxu2 %v2880_v38  ;;  %v3471_v59 = vld [vmem:[#allocation9 + $0x184] sm:$0xf]  ;;  %v2909_v38 = vld [vmem:[#allocation9 + $0x188] sm:$0xf0]  ;;  %v3513_v25 = vld [vmem:[#allocation9 + $0x2d4] sm:$0xf] }
 0x234   : > { %1539 = vmatpush.bf16.msrb.mxu3 %v2944_v18  ;;  %1274 = vmatmul.bf16.vlgmr.msra.gmra.mxu2 %v1076_v21  ;;  %v953_v18 = vrot.slane %v952_v36, 1  ;;  %v3003_v33 = vld [vmem:[#allocation9 + $0x240] sm:$0xf]  ;;  %v3512_v3 = vld [vmem:[#allocation9 + $0x2c4] sm:$0xf0]  ;;  %v3080_v5 = vor.u32 %v3513_v25, %v3077_v35 }
 0x235   : > { %1287 = vmatmul.bf16.vlgmr.msra.gmra.mxu3 %v1077_v46  ;;  %1248 = vmatmul.bf16.vlgmr.msra.gmra.mxu0 %v1076_v21  ;;  %v3514_v21 = vld [vmem:[#allocation9 + $0x2d4] sm:$0xf0]  ;;  %v925_v63 = vld [vmem:[#allocation2 + $0x20] sm:$0xff]  ;;  %v2995_v57 = vld [vmem:[#allocation9 + $0x230] sm:$0xf] }
 0x236   : > { %1501 = vmatpush.bf16.msrb.mxu0 %v2868_v10  ;;  %1261 = vmatmul.bf16.vlgmr.msra.gmra.mxu1 %v1077_v46  ;;  %v3093_v10 = vld [vmem:[#allocation9 + $0x2f8] sm:$0xf0]  ;;  %v954_v6 = vadd.f32 %v953_v18, %v952_v36  ;;  %v3495_v36 = vld [vmem:[#allocation9 + $0x244] sm:$0xf]  ;;  %v3494_v41 = vld [vmem:[#allocation9 + $0x234] sm:$0xf0] }
 0x237   : > { %1514 = vmatpush.bf16.msrb.mxu1 %v2932_v11  ;;  %1527 = vmatpush.bf16.msrb.mxu2 %v2872_v40  ;;  %v2848_v11 = vor.u32 %v3455_v4, %v2845_v37  ;;  %v2912_v40 = vor.u32 %v3471_v59, %v2909_v38  ;;  %v3096_v50 = vor.u32 %v3517_v44, %v3093_v10  ;;  %v3069_v37 = vld [vmem:[#allocation9 + $0x2c8] sm:$0xf0]  ;;  %v955_v18 = vrot.slane %v925_v63, 4  ;;  %v3510_v54 = vld [vmem:[#allocation9 + $0x2b4] sm:$0xf0] }
 0x238   : > { %1540 = vmatpush.bf16.msrb.mxu3 %v2936_v14  ;;  %v4379_v49 = vmul.f32 0.00390625, %v954_v6  ;;  %v3032_v14 = vor.u32 %v3501_v0, %v3029_v42  ;;  %v3016_v4 = vor.u32 %v3497_v24, %v3013_v47  ;;  %v3068_v38 = vor.u32 %v3512_v3, %v3067_v2  ;;  %v3493_v42 = vld [vmem:[#allocation9 + $0x234] sm:$0xf]  ;;  %v2997_v10 = vld [vmem:[#allocation9 + $0x238] sm:$0xf0] }
 0x239   : > { %v956_v44 = vadd.f32 %v955_v18, %v925_v63  ;;  %v3509_v7 = vld [vmem:[#allocation9 + $0x2b4] sm:$0xf]  ;;  %v3061_v6 = vld [vmem:[#allocation9 + $0x2b8] sm:$0xf0]  ;;  %v3492_v13 = vld [vmem:[#allocation9 + $0x224] sm:$0xf0]  ;;  %v3000_v30 = vor.u32 %v3493_v42, %v2997_v10 }
 0x23a   : > { %1502 = vmatpush.bf16.msrb.mxu0 %v2860_v53  ;;  %v1030_v31 = vmax.f32 %v4379_v49, 0.0  ;;  %v3515_v53 = vld [vmem:[#allocation9 + $0x2e4] sm:$0xf]  ;;  %v3508_v22 = vld [vmem:[#allocation9 + $0x2a4] sm:$0xf0]  ;;  %v927_v3 = vld [vmem:[#allocation2 + $0x30] sm:$0xff] }
 0x23b   : > { %1515 = vmatpush.bf16.msrb.mxu1 %v2924_v19  ;;  %1528 = vmatpush.bf16.msrb.mxu2 %v2864_v26  ;;  %v3088_v27 = vor.u32 %v3515_v53, %v3085_v28  ;;  %v3507_v53 = vld [vmem:[#allocation9 + $0x2a4] sm:$0xf]  ;;  %v3053_v28 = vld [vmem:[#allocation9 + $0x2a8] sm:$0xf0]  ;;  %v3490_v20 = vld [vmem:[#allocation9 + $0x214] sm:$0xf0] }
 0x23c   : > { %1541 = vmatpush.bf16.msrb.mxu3 %v2928_v34  ;;  %v1038_v19 = vpack.c.bf16 %v1030_v31, %v1029_v23  ;;  %v3024_v34 = vor.u32 %v3499_v15, %v3021_v52  ;;  %v3064_v23 = vor.u32 %v3509_v7, %v3061_v6  ;;  %v3491_v31 = vld [vmem:[#allocation9 + $0x224] sm:$0xf]  ;;  %v2989_v15 = vld [vmem:[#allocation9 + $0x228] sm:$0xf0]  ;;  %v3056_v24 = vor.u32 %v3507_v53, %v3053_v28  ;;  %v2981_v47 = vld [vmem:[#allocation9 + $0x218] sm:$0xf0] }
 0x23d   : > { %v3505_v25 = vld [vmem:[#allocation9 + $0x294] sm:$0xf]  ;;  %v3045_v35 = vld [vmem:[#allocation9 + $0x298] sm:$0xf0]  ;;  %v3035_v63 = vld [vmem:[#allocation9 + $0x280] sm:$0xf] }
 0x23e   : > { %1503 = vmatpush.bf16.msrb.mxu0 %v2852_v62  ;;  %v1333_v46 = vperm.slane %v1038_v19, 0  ;;  %v1334_v26 = vperm.slane %v1038_v19, 4  ;;  %v3076_v62 = vor.u32 %v3514_v21, %v3075_v9  ;;  %v2979_v19 = vld [vmem:[#allocation9 + $0x210] sm:$0xf]  ;;  %v3037_v42 = vld [vmem:[#allocation9 + $0x288] sm:$0xf0] }
 0x23f   : > { %1516 = vmatpush.bf16.msrb.mxu1 %v2916_v16  ;;  %1529 = vmatpush.bf16.msrb.mxu2 %v2856_v58  ;;  %v3496_v16 = vld [vmem:[#allocation9 + $0x244] sm:$0xf0]  ;;  %v3005_v58 = vld [vmem:[#allocation9 + $0x248] sm:$0xf0]  ;;  %v3043_v9 = vld [vmem:[#allocation9 + $0x290] sm:$0xf] }
 0x240   : > { %1542 = vmatpush.bf16.msrb.mxu3 %v2920_v17  ;;  %v3511_v17 = vld [vmem:[#allocation9 + $0x2c4] sm:$0xf]  ;;  %v3004_v59 = vor.u32 %v3496_v16, %v3003_v33  ;;  %v3008_v0 = vor.u32 %v3495_v36, %v3005_v58  ;;  %v3488_v33 = vld [vmem:[#allocation9 + $0x204] sm:$0xf0]  ;;  %v3211_v53 = vld [vmem:[#allocation9 + $0x3e0] sm:$0xf] }
 0x241   : > { %v3504_v16 = vld [vmem:[#allocation9 + $0x284] sm:$0xf0]  ;;  %v3487_v58 = vld [vmem:[#allocation9 + $0x204] sm:$0xf] }
 0x242   : > { %1504 = vmatpush.bf16.msrb.mxu0 %v2844_v60  ;;  %v3059_v60 = vld [vmem:[#allocation9 + $0x2b0] sm:$0xf]  ;;  %v3036_v6 = vor.u32 %v3504_v16, %v3035_v63  ;;  %v3548_v28 = vld [vmem:[#allocation9 + $0x3e4] sm:$0xf0]  ;;  %v3545_v63 = vld [vmem:[#allocation9 + $0x3d4] sm:$0xf] }
 0x243   : > { %1517 = vmatpush.bf16.msrb.mxu1 %v2908_v1  ;;  %1530 = vmatpush.bf16.msrb.mxu2 %v2848_v11  ;;  %v3072_v1 = vor.u32 %v3511_v17, %v3069_v37  ;;  %v962_v11 = vadd.f32 %v961_v61, %v926_v39  ;;  %v2973_v17 = vld [vmem:[#allocation9 + $0x208] sm:$0xf0]  ;;  %v3155_v37 = vld [vmem:[#allocation9 + $0x370] sm:$0xf]  ;;  %v3205_v16 = vld [vmem:[#allocation9 + $0x3d8] sm:$0xf0] }
 0x244   : > { %1543 = vmatpush.bf16.msrb.mxu3 %v2912_v40  ;;  %v2996_v40 = vor.u32 %v3494_v41, %v2995_v57  ;;  %v3503_v57 = vld [vmem:[#allocation9 + $0x284] sm:$0xf]  ;;  %v3534_v41 = vld [vmem:[#allocation9 + $0x374] sm:$0xf0]  ;;  %v3219_v39 = vld [vmem:[#allocation9 + $0x3f0] sm:$0xf] }
 0x245   : > { %1505 = vmatmul.bf16.vlgmr.msrb.gmra.mxu0 %v1333_v46  ;;  %v963_v51 = vrot.slane %v962_v11, 2 }
 0x246   : > { %1753 = vmatpush.bf16.msra.mxu0 %v3028_v56  ;;  %1531 = vmatmul.bf16.vlgmr.msrb.gmra.mxu2 %v1333_v46  ;;  %v3060_v56 = vor.u32 %v3510_v54, %v3059_v60  ;;  %v3506_v46 = vld [vmem:[#allocation9 + $0x294] sm:$0xf0]  ;;  %v3048_v60 = vor.u32 %v3505_v25, %v3045_v35  ;;  %v3203_v35 = vld [vmem:[#allocation9 + $0x3d0] sm:$0xf] }
 0x247   : > { %1766 = vmatpush.bf16.msra.mxu1 %v3092_v48  ;;  %1779 = vmatpush.bf16.msra.mxu2 %v3032_v14  ;;  %v2987_v48 = vld [vmem:[#allocation9 + $0x220] sm:$0xf]  ;;  %v957_v14 = vrot.slane %v956_v44, 2  ;;  %v3044_v36 = vor.u32 %v3506_v46, %v3043_v9  ;;  %v3550_v54 = vld [vmem:[#allocation9 + $0x3f4] sm:$0xf0]  ;;  %v3212_v46 = vor.u32 %v3548_v28, %v3211_v53 }
 0x248   : > { %1792 = vmatpush.bf16.msra.mxu3 %v3096_v50  ;;  %1518 = vmatmul.bf16.vlgmr.msrb.gmra.mxu1 %v1334_v26  ;;  %v3051_v50 = vld [vmem:[#allocation9 + $0x2a0] sm:$0xf]  ;;  %v3540_v28 = vld [vmem:[#allocation9 + $0x3a4] sm:$0xf0] }
 0x249   : > { %1544 = vmatmul.bf16.vlgmr.msrb.gmra.mxu3 %v1334_v26  ;;  %v958_v52 = vadd.f32 %v957_v14, %v956_v44  ;;  %v3052_v8 = vor.u32 %v3508_v22, %v3051_v50  ;;  %v3489_v26 = vld [vmem:[#allocation9 + $0x214] sm:$0xf]  ;;  %v3220_v14 = vor.u32 %v3550_v54, %v3219_v39  ;;  %v3040_v22 = vor.u32 %v3503_v57, %v3037_v42  ;;  %v3544_v57 = vld [vmem:[#allocation9 + $0x3c4] sm:$0xf0]  ;;  %v3133_v39 = vld [vmem:[#allocation9 + $0x348] sm:$0xf0] }
 0x24a   : > { %1754 = vmatpush.bf16.msra.mxu0 %v3020_v55  ;;  %v964_v55 = vadd.f32 %v963_v51, %v962_v11  ;;  %v3533_v44 = vld [vmem:[#allocation9 + $0x374] sm:$0xf]  ;;  %v3157_v11 = vld [vmem:[#allocation9 + $0x378] sm:$0xf0]  ;;  %v3147_v51 = vld [vmem:[#allocation9 + $0x360] sm:$0xf] }
 0x24b   : > { %1767 = vmatpush.bf16.msra.mxu1 %v3084_v29  ;;  %1780 = vmatpush.bf16.msra.mxu2 %v3024_v34  ;;  %v2988_v29 = vor.u32 %v3492_v13, %v2987_v48  ;;  %v959_v21 = vrot.slane %v958_v52, 1  ;;  %v2976_v48 = vor.u32 %v3487_v58, %v2973_v17  ;;  %v3156_v13 = vor.u32 %v3534_v41, %v3155_v37  ;;  %v3527_v41 = vld [vmem:[#allocation9 + $0x344] sm:$0xf]  ;;  %v3197_v54 = vld [vmem:[#allocation9 + $0x3c8] sm:$0xf0] }
 0x24c   : > { %1793 = vmatpush.bf16.msra.mxu3 %v3088_v27  ;;  %v965_v34 = vrot.slane %v964_v55, 1  ;;  %v2992_v27 = vor.u32 %v3491_v31, %v2989_v15  ;;  %v3160_v15 = vor.u32 %v3533_v44, %v3157_v11  ;;  %v3208_v37 = vor.u32 %v3545_v63, %v3205_v16  ;;  %v3526_v42 = vld [vmem:[#allocation9 + $0x334] sm:$0xf0]  ;;  %v3187_v11 = vld [vmem:[#allocation9 + $0x3b0] sm:$0xf]  ;;  %v929_v16 = vld [vmem:[#allocation2 + $0x40] sm:$0xff] }
 0x24d   : > { %v3179_v53 = vld [vmem:[#allocation9 + $0x3a0] sm:$0xf] }
 0x24e   : > { %1755 = vmatpush.bf16.msra.mxu0 %v3012_v32  ;;  %v960_v32 = vadd.f32 %v959_v21, %v958_v52  ;;  %v966_v2 = vadd.f32 %v965_v34, %v964_v55  ;;  %v3149_v55 = vld [vmem:[#allocation9 + $0x368] sm:$0xf0]  ;;  %v3530_v34 = vld [vmem:[#allocation9 + $0x354] sm:$0xf0]  ;;  %v3099_v63 = vld [vmem:[#allocation9 + $0x300] sm:$0xf] }
 0x24f   : > { %1768 = vmatpush.bf16.msra.mxu1 %v3076_v62  ;;  %1781 = vmatpush.bf16.msra.mxu2 %v3016_v4  ;;  %v2971_v62 = vld [vmem:[#allocation9 + $0x200] sm:$0xf] }
 0x250   : > { %1794 = vmatpush.bf16.msra.mxu3 %v3080_v5  ;;  %v928_v4 = vld [vmem:[#allocation2 + $0x38] sm:$0xff]  ;;  %v2980_v5 = vor.u32 %v3490_v20, %v2979_v19  ;;  %v4385_v18 = vmul.f32 0.00390625, %v966_v2  ;;  %v2972_v7 = vor.u32 %v3488_v33, %v2971_v62  ;;  %v3531_v19 = vld [vmem:[#allocation9 + $0x364] sm:$0xf]  ;;  %v3529_v62 = vld [vmem:[#allocation9 + $0x354] sm:$0xf] }
 0x251   : > { %v3141_v33 = vld [vmem:[#allocation9 + $0x358] sm:$0xf0] }
 0x252   : > { %1756 = vmatpush.bf16.msra.mxu0 %v3004_v59  ;;  %v4383_v59 = vmul.f32 0.00390625, %v960_v32  ;;  %v1032_v10 = vmax.f32 %v4385_v18, 0.0  ;;  %v3546_v32 = vld [vmem:[#allocation9 + $0x3d4] sm:$0xf0]  ;;  %v3144_v17 = vor.u32 %v3529_v62, %v3141_v33  ;;  %v3537_v62 = vld [vmem:[#allocation9 + $0x394] sm:$0xf] }
 0x253   : > { %1769 = vmatpush.bf16.msra.mxu1 %v3068_v38  ;;  %1782 = vmatpush.bf16.msra.mxu2 %v3008_v0  ;;  %v2984_v38 = vor.u32 %v3489_v26, %v2981_v47  ;;  %v967_v0 = vrot.slane %v927_v3, 4  ;;  %v3139_v26 = vld [vmem:[#allocation9 + $0x350] sm:$0xf]  ;;  %v3152_v47 = vor.u32 %v3531_v19, %v3149_v55  ;;  %v3523_v19 = vld [vmem:[#allocation9 + $0x324] sm:$0xf] }
 0x254   : > { %1795 = vmatpush.bf16.msra.mxu3 %v3072_v1  ;;  %v1031_v61 = vmax.f32 %v4383_v59, 0.0  ;;  %v973_v1 = vrot.slane %v928_v4, 4  ;;  %v3140_v2 = vor.u32 %v3530_v34, %v3139_v26  ;;  %v3117_v55 = vld [vmem:[#allocation9 + $0x328] sm:$0xf0]  ;;  %v3180_v26 = vor.u32 %v3540_v28, %v3179_v53  ;;  %v3538_v34 = vld [vmem:[#allocation9 + $0x394] sm:$0xf0] }
 0x255   : > { %v3173_v33 = vld [vmem:[#allocation9 + $0x398] sm:$0xf0] }
 0x256   : > { %1757 = vmatpush.bf16.msra.mxu0 %v2996_v40  ;;  %v3549_v40 = vld [vmem:[#allocation9 + $0x3f4] sm:$0xf]  ;;  %v1039_v50 = vpack.c.bf16 %v1032_v10, %v1031_v61  ;;  %v974_v31 = vadd.f32 %v973_v1, %v928_v4  ;;  %v3131_v4 = vld [vmem:[#allocation9 + $0x340] sm:$0xf]  ;;  %v3123_v1 = vld [vmem:[#allocation9 + $0x330] sm:$0xf] }
 0x257   : > { %1770 = vmatpush.bf16.msra.mxu1 %v3060_v56  ;;  %1783 = vmatpush.bf16.msra.mxu2 %v3000_v30  ;;  %v3221_v56 = vld [vmem:[#allocation9 + $0x3f8] sm:$0xf0]  ;;  %v3532_v30 = vld [vmem:[#allocation9 + $0x364] sm:$0xf0] }
 0x258   : > { %1796 = vmatpush.bf16.msra.mxu3 %v3064_v23  ;;  %v968_v23 = vadd.f32 %v967_v0, %v927_v3  ;;  %v3224_v52 = vor.u32 %v3549_v40, %v3221_v56  ;;  %v1589_v20 = vperm.slane %v1039_v50, 0  ;;  %v1590_v9 = vperm.slane %v1039_v50, 4  ;;  %v3542_v40 = vld [vmem:[#allocation9 + $0x3b4] sm:$0xf0]  ;;  %v3525_v56 = vld [vmem:[#allocation9 + $0x334] sm:$0xf] }
 0x259   : > { %v3148_v21 = vor.u32 %v3532_v30, %v3147_v51  ;;  %v3204_v3 = vor.u32 %v3546_v32, %v3203_v35  ;;  %v3124_v50 = vor.u32 %v3526_v42, %v3123_v1  ;;  %v3115_v51 = vld [vmem:[#allocation9 + $0x320] sm:$0xf]  ;;  %v3524_v30 = vld [vmem:[#allocation9 + $0x324] sm:$0xf0]  ;;  %v3109_v32 = vld [vmem:[#allocation9 + $0x318] sm:$0xf0] }
 0x25a   : > { %1758 = vmatpush.bf16.msra.mxu0 %v2988_v29  ;;  %v3547_v29 = vld [vmem:[#allocation9 + $0x3e4] sm:$0xf] }
 0x25b   : > { %1771 = vmatpush.bf16.msra.mxu1 %v3052_v8  ;;  %1784 = vmatpush.bf16.msra.mxu2 %v2992_v27  ;;  %v3213_v8 = vld [vmem:[#allocation9 + $0x3e8] sm:$0xf0]  ;;  %v969_v27 = vrot.slane %v968_v23, 2 }
 0x25c   : > { %1797 = vmatpush.bf16.msra.mxu3 %v3056_v24  ;;  %v975_v24 = vrot.slane %v974_v31, 2  ;;  %v3216_v25 = vor.u32 %v3547_v29, %v3213_v8  ;;  %v3539_v29 = vld [vmem:[#allocation9 + $0x3a4] sm:$0xf]  ;;  %v3181_v8 = vld [vmem:[#allocation9 + $0x3a8] sm:$0xf0] }
 0x25d   : > { %v3184_v35 = vor.u32 %v3539_v29, %v3181_v8  ;;  %v3580_v29 = vld [vmem:[#allocation9 + $0x4e4] sm:$0xf0] }
 0x25e   : > { %1759 = vmatpush.bf16.msra.mxu0 %v2980_v5  ;;  %v3528_v5 = vld [vmem:[#allocation9 + $0x344] sm:$0xf0]  ;;  %v976_v58 = vadd.f32 %v975_v24, %v974_v31 }
 0x25f   : > { %1772 = vmatpush.bf16.msra.mxu1 %v3044_v36  ;;  %1785 = vmatpush.bf16.msra.mxu2 %v2984_v38  ;;  %v970_v36 = vadd.f32 %v969_v27, %v968_v23  ;;  %v3195_v38 = vld [vmem:[#allocation9 + $0x3c0] sm:$0xf]  ;;  %v3132_v61 = vor.u32 %v3528_v5, %v3131_v4  ;;  %v3521_v27 = vld [vmem:[#allocation9 + $0x314] sm:$0xf]  ;;  %v3520_v4 = vld [vmem:[#allocation9 + $0x304] sm:$0xf0] }
 0x260   : > { %1798 = vmatpush.bf16.msra.mxu3 %v3048_v60  ;;  %v3543_v60 = vld [vmem:[#allocation9 + $0x3c4] sm:$0xf]  ;;  %v3196_v0 = vor.u32 %v3544_v57, %v3195_v38  ;;  %v977_v10 = vrot.slane %v976_v58, 1  ;;  %v3163_v5 = vld [vmem:[#allocation9 + $0x380] sm:$0xf] }
 0x261   : > { %v971_v44 = vrot.slane %v970_v36, 1  ;;  %v3536_v38 = vld [vmem:[#allocation9 + $0x384] sm:$0xf0]  ;;  %v3519_v57 = vld [vmem:[#allocation9 + $0x304] sm:$0xf] }
 0x262   : > { %1760 = vmatpush.bf16.msra.mxu0 %v2972_v7  ;;  %v3136_v7 = vor.u32 %v3527_v41, %v3133_v39  ;;  %v978_v31 = vadd.f32 %v977_v10, %v976_v58  ;;  %v3283_v10 = vld [vmem:[#allocation9 + $0x470] sm:$0xf] }
 0x263   : > { %1773 = vmatpush.bf16.msra.mxu1 %v3036_v6  ;;  %1786 = vmatpush.bf16.msra.mxu2 %v2976_v48  ;;  %v3200_v6 = vor.u32 %v3543_v60, %v3197_v54  ;;  %v3125_v48 = vld [vmem:[#allocation9 + $0x338] sm:$0xf0]  ;;  %v972_v23 = vadd.f32 %v971_v44, %v970_v36  ;;  %v979_v36 = vrot.slane %v929_v16, 4  ;;  %v3176_v60 = vor.u32 %v3537_v62, %v3173_v33  ;;  %v3101_v54 = vld [vmem:[#allocation9 + $0x308] sm:$0xf0] }
 0x264   : > { %1799 = vmatpush.bf16.msra.mxu3 %v3040_v22  ;;  %v3188_v22 = vor.u32 %v3542_v40, %v3187_v11  ;;  %v1012_v44 = vsel %vm1011_vm2, %v4377_v12, %v4371_v45  ;;  %v1019_v11 = vsel %vm1011_vm2, %v4379_v49, %v4373_v43  ;;  %v3100_v40 = vor.u32 %v3520_v4, %v3099_v63 }
 0x265   : > { %1761 = vmatmul.bf16.vlgmr.msra.gmra.mxu0 %v1589_v20  ;;  %v4389_v24 = vmul.f32 0.00390625, %v972_v23  ;;  %v980_v1 = vadd.f32 %v979_v36, %v929_v16  ;;  %v3349_v23 = vld [vmem:[#allocation9 + $0x4f8] sm:$0xf0]  ;;  %v1014_v49 = vsel %vm1013_vm3, %v4383_v59, %v1012_v44  ;;  %v3341_v59 = vld [vmem:[#allocation9 + $0x4e8] sm:$0xf0] }
 0x266   : > { %2009 = vmatpush.bf16.msrb.mxu0 %v3156_v13  ;;  %1774 = vmatmul.bf16.vlgmr.msra.gmra.mxu1 %v1590_v9  ;;  %v3541_v13 = vld [vmem:[#allocation9 + $0x3b4] sm:$0xf]  ;;  %v3578_v36 = vld [vmem:[#allocation9 + $0x4d4] sm:$0xf0]  ;;  %v3576_v44 = vld [vmem:[#allocation9 + $0x4c4] sm:$0xf0] }
 0x267   : > { %2022 = vmatpush.bf16.msrb.mxu1 %v3220_v14  ;;  %2035 = vmatpush.bf16.msrb.mxu2 %v3160_v15  ;;  %v3189_v14 = vld [vmem:[#allocation9 + $0x3b8] sm:$0xf0]  ;;  %v3128_v15 = vor.u32 %v3525_v56, %v3125_v48  ;;  %v1033_v41 = vmax.f32 %v4389_v24, 0.0  ;;  %v3582_v56 = vld [vmem:[#allocation9 + $0x4f4] sm:$0xf0]  ;;  %v1016_v33 = vsel %vm1015_vm4, %v4389_v24, %v1014_v49 }
 0x268   : > { %2048 = vmatpush.bf16.msrb.mxu3 %v3224_v52  ;;  %1787 = vmatmul.bf16.vlgmr.msra.gmra.mxu2 %v1589_v20  ;;  %v3192_v52 = vor.u32 %v3541_v13, %v3189_v14  ;;  %v3107_v20 = vld [vmem:[#allocation9 + $0x310] sm:$0xf]  ;;  %v3565_v48 = vld [vmem:[#allocation9 + $0x474] sm:$0xf]  ;;  %v981_v13 = vrot.slane %v980_v1, 2 }
 0x269   : > { %1800 = vmatmul.bf16.vlgmr.msra.gmra.mxu3 %v1590_v9  ;;  %v3522_v9 = vld [vmem:[#allocation9 + $0x314] sm:$0xf0]  ;;  %v3269_v24 = vld [vmem:[#allocation9 + $0x458] sm:$0xf0]  ;;  %v3556_v49 = vld [vmem:[#allocation9 + $0x424] sm:$0xf0] }
 0x26a   : > { %2010 = vmatpush.bf16.msrb.mxu0 %v3148_v21  ;;  %v3171_v21 = vld [vmem:[#allocation9 + $0x390] sm:$0xf] }
 0x26b   : > { %2023 = vmatpush.bf16.msrb.mxu1 %v3212_v46  ;;  %2036 = vmatpush.bf16.msrb.mxu2 %v3152_v47  ;;  %v3116_v46 = vor.u32 %v3524_v30, %v3115_v51  ;;  %v4391_v47 = vmul.f32 0.00390625, %v978_v31  ;;  %v3285_v51 = vld [vmem:[#allocation9 + $0x478] sm:$0xf0]  ;;  %v3581_v30 = vld [vmem:[#allocation9 + $0x4f4] sm:$0xf] }
 0x26c   : > { %2049 = vmatpush.bf16.msrb.mxu3 %v3216_v25  ;;  %v3120_v25 = vor.u32 %v3523_v19, %v3117_v55  ;;  %v3275_v31 = vld [vmem:[#allocation9 + $0x460] sm:$0xf]  ;;  %v3564_v19 = vld [vmem:[#allocation9 + $0x464] sm:$0xf0]  ;;  %v3288_v8 = vor.u32 %v3565_v48, %v3285_v51  ;;  %v3251_v48 = vld [vmem:[#allocation9 + $0x430] sm:$0xf] }
 0x26d   : > { %v1034_v39 = vmax.f32 %v4391_v47, 0.0  ;;  %v3339_v55 = vld [vmem:[#allocation9 + $0x4e0] sm:$0xf]  ;;  %v3574_v51 = vld [vmem:[#allocation9 + $0x4b4] sm:$0xf0] }
 0x26e   : > { %2011 = vmatpush.bf16.msrb.mxu0 %v3140_v2  ;;  %v930_v2 = vld [vmem:[#allocation2 + $0x48] sm:$0xff]  ;;  %v3340_v16 = vor.u32 %v3580_v29, %v3339_v55  ;;  %v3555_v55 = vld [vmem:[#allocation9 + $0x424] sm:$0xf] }
 0x26f   : > { %2024 = vmatpush.bf16.msrb.mxu1 %v3204_v3  ;;  %2037 = vmatpush.bf16.msrb.mxu2 %v3144_v17  ;;  %v3108_v3 = vor.u32 %v3522_v9, %v3107_v20  ;;  %v985_v58 = vrot.slane %v930_v2, 4  ;;  %v3172_v17 = vor.u32 %v3538_v34, %v3171_v21  ;;  %v1040_v45 = vpack.c.bf16 %v1034_v39, %v1033_v41  ;;  %v3563_v9 = vld [vmem:[#allocation9 + $0x464] sm:$0xf]  ;;  %v3277_v21 = vld [vmem:[#allocation9 + $0x468] sm:$0xf0] }
 0x270   : > { %2050 = vmatpush.bf16.msrb.mxu3 %v3208_v37  ;;  %v3112_v37 = vor.u32 %v3521_v27, %v3109_v32  ;;  %v3352_v20 = vor.u32 %v3581_v30, %v3349_v23  ;;  %v3280_v4 = vor.u32 %v3563_v9, %v3277_v21  ;;  %v3557_v30 = vld [vmem:[#allocation9 + $0x434] sm:$0xf]  ;;  %v3253_v23 = vld [vmem:[#allocation9 + $0x438] sm:$0xf0]  ;;  %v3245_v29 = vld [vmem:[#allocation9 + $0x428] sm:$0xf0] }
 0x271   : > { %v986_v42 = vadd.f32 %v985_v58, %v930_v2  ;;  %v1845_v34 = vperm.slane %v1040_v45, 0  ;;  %v1846_v27 = vperm.slane %v1040_v45, 4  ;;  %v3562_v2 = vld [vmem:[#allocation9 + $0x454] sm:$0xf0]  ;;  %v3561_v58 = vld [vmem:[#allocation9 + $0x454] sm:$0xf] }
 0x272   : > { %2012 = vmatpush.bf16.msrb.mxu0 %v3132_v61  ;;  %v3535_v61 = vld [vmem:[#allocation9 + $0x384] sm:$0xf]  ;;  %v3573_v45 = vld [vmem:[#allocation9 + $0x4b4] sm:$0xf] }
 0x273   : > { %2025 = vmatpush.bf16.msrb.mxu1 %v3196_v0  ;;  %2038 = vmatpush.bf16.msrb.mxu2 %v3136_v7  ;;  %v3165_v0 = vld [vmem:[#allocation9 + $0x388] sm:$0xf0]  ;;  %v3566_v7 = vld [vmem:[#allocation9 + $0x474] sm:$0xf0]  ;;  %v987_v14 = vrot.slane %v986_v42, 2 }
 0x274   : > { %2051 = vmatpush.bf16.msrb.mxu3 %v3200_v6  ;;  %v3347_v6 = vld [vmem:[#allocation9 + $0x4f0] sm:$0xf]  ;;  %v3168_v12 = vor.u32 %v3535_v61, %v3165_v0  ;;  %v3284_v53 = vor.u32 %v3566_v7, %v3283_v10  ;;  %v3560_v61 = vld [vmem:[#allocation9 + $0x444] sm:$0xf0]  ;;  %v3323_v0 = vld [vmem:[#allocation9 + $0x4c0] sm:$0xf] }
 0x275   : > { %v988_v43 = vadd.f32 %v987_v14, %v986_v42  ;;  %v3348_v28 = vor.u32 %v3582_v56, %v3347_v6  ;;  %v3559_v10 = vld [vmem:[#allocation9 + $0x444] sm:$0xf]  ;;  %v3261_v7 = vld [vmem:[#allocation9 + $0x448] sm:$0xf0]  ;;  %v3324_v56 = vor.u32 %v3576_v44, %v3323_v0 }
 0x276   : > { %2013 = vmatpush.bf16.msrb.mxu0 %v3124_v50  ;;  %v3164_v50 = vor.u32 %v3536_v38, %v3163_v5  ;;  %v3577_v38 = vld [vmem:[#allocation9 + $0x4d4] sm:$0xf]  ;;  %v3575_v6 = vld [vmem:[#allocation9 + $0x4c4] sm:$0xf]  ;;  %v3264_v14 = vor.u32 %v3559_v10, %v3261_v7 }
 0x277   : > { %2026 = vmatpush.bf16.msrb.mxu1 %v3188_v22  ;;  %2039 = vmatpush.bf16.msrb.mxu2 %v3128_v15  ;;  %v3104_v22 = vor.u32 %v3519_v57, %v3101_v54  ;;  %v982_v15 = vadd.f32 %v981_v13, %v980_v1  ;;  %v3259_v57 = vld [vmem:[#allocation9 + $0x440] sm:$0xf]  ;;  %v3272_v1 = vor.u32 %v3561_v58, %v3269_v24  ;;  %v3558_v13 = vld [vmem:[#allocation9 + $0x434] sm:$0xf0]  ;;  %v3568_v24 = vld [vmem:[#allocation9 + $0x484] sm:$0xf0] }
 0x278   : > { %2052 = vmatpush.bf16.msrb.mxu3 %v3192_v52  ;;  %v1020_v52 = vsel %vm1013_vm3, %v4385_v18, %v1019_v11  ;;  %v3276_v18 = vor.u32 %v3564_v19, %v3275_v31  ;;  %v3325_v11 = vld [vmem:[#allocation9 + $0x4c8] sm:$0xf0]  ;;  %v3252_v31 = vor.u32 %v3558_v13, %v3251_v48  ;;  %v3572_v19 = vld [vmem:[#allocation9 + $0x4a4] sm:$0xf0]  ;;  %v3291_v58 = vld [vmem:[#allocation9 + $0x480] sm:$0xf] }
 0x279   : > { %v1021_v63 = vsel %vm1015_vm4, %v4391_v47, %v1020_v52  ;;  %v3333_v47 = vld [vmem:[#allocation9 + $0x4d8] sm:$0xf0]  ;;  %v3256_v52 = vor.u32 %v3557_v30, %v3253_v23 }
 0x27a   : > { %2014 = vmatpush.bf16.msrb.mxu0 %v3116_v46  ;;  %v983_v46 = vrot.slane %v982_v15, 1  ;;  %v3336_v42 = vor.u32 %v3577_v38, %v3333_v47  ;;  %v3551_v38 = vld [vmem:[#allocation9 + $0x404] sm:$0xf]  ;;  %v3229_v47 = vld [vmem:[#allocation9 + $0x408] sm:$0xf0] }
 0x27b   : > { %2027 = vmatpush.bf16.msrb.mxu1 %v3180_v26  ;;  %2040 = vmatpush.bf16.msrb.mxu2 %v3120_v25  ;;  %v989_v26 = vrot.slane %v988_v43, 1  ;;  %v3579_v25 = vld [vmem:[#allocation9 + $0x4e4] sm:$0xf] }
 0x27c   : > { %2053 = vmatpush.bf16.msrb.mxu3 %v3184_v35  ;;  %v3267_v35 = vld [vmem:[#allocation9 + $0x450] sm:$0xf]  ;;  %v984_v32 = vadd.f32 %v983_v46, %v982_v15  ;;  %v3344_v5 = vor.u32 %v3579_v25, %v3341_v59  ;;  %v3570_v59 = vld [vmem:[#allocation9 + $0x494] sm:$0xf0] }
 0x27d   : > { %v990_v62 = vadd.f32 %v989_v26, %v988_v43  ;;  %v3243_v43 = vld [vmem:[#allocation9 + $0x420] sm:$0xf]  ;;  %v3235_v46 = vld [vmem:[#allocation9 + $0x410] sm:$0xf]  ;;  %v3554_v26 = vld [vmem:[#allocation9 + $0x414] sm:$0xf0] }
 0x27e   : > { %2015 = vmatpush.bf16.msrb.mxu0 %v3108_v3  ;;  %v3331_v3 = vld [vmem:[#allocation9 + $0x4d0] sm:$0xf]  ;;  %v3244_v9 = vor.u32 %v3556_v49, %v3243_v43 }
 0x27f   : > { %2028 = vmatpush.bf16.msrb.mxu1 %v3172_v17  ;;  %2041 = vmatpush.bf16.msrb.mxu2 %v3112_v37  ;;  %v4409_v17 = vmul.f32 0.00390625, %v984_v32  ;;  %v4411_v37 = vmul.f32 0.00390625, %v990_v62  ;;  %v3332_v54 = vor.u32 %v3578_v36, %v3331_v3  ;;  %v3299_v25 = vld [vmem:[#allocation9 + $0x490] sm:$0xf]  ;;  %v3569_v32 = vld [vmem:[#allocation9 + $0x494] sm:$0xf] }
 0x280   : > { %2054 = vmatpush.bf16.msrb.mxu3 %v3176_v60  ;;  %v3268_v60 = vor.u32 %v3562_v2, %v3267_v35  ;;  %v3237_v35 = vld [vmem:[#allocation9 + $0x418] sm:$0xf0]  ;;  %v3300_v2 = vor.u32 %v3570_v59, %v3299_v25  ;;  %v3227_v3 = vld [vmem:[#allocation9 + $0x400] sm:$0xf] }
 0x281   : > { %v1018_v41 = vsel %vm1017_vm5, %v4409_v17, %v1016_v33  ;;  %v1022_v39 = vsel %vm1017_vm5, %v4411_v37, %v1021_v63  ;;  %v3301_v62 = vld [vmem:[#allocation9 + $0x498] sm:$0xf0]  ;;  %v1035_v33 = vmax.f32 %v4409_v17, 0.0  ;;  %v1036_v63 = vmax.f32 %v4411_v37, 0.0 }
 0x282   : > { %2016 = vmatpush.bf16.msrb.mxu0 %v3100_v40  ;;  %1025 = vst [vmem:[%s4159_s18] sm:$0x1f] %v1018_v41  ;;  %v3260_v40 = vor.u32 %v3560_v61, %v3259_v57  ;;  %v3304_v36 = vor.u32 %v3569_v32, %v3301_v62  ;;  %v3567_v57 = vld [vmem:[#allocation9 + $0x484] sm:$0xf]  ;;  %v3293_v41 = vld [vmem:[#allocation9 + $0x488] sm:$0xf0]  ;;  %v3292_v37 = vor.u32 %v3568_v24, %v3291_v58  ;;  %v3598_v25 = vld [vmem:[#allocation11 + $0x78] sm:$0xff] }
 0x283   : > { %2029 = vmatpush.bf16.msrb.mxu1 %v3164_v50  ;;  %2042 = vmatpush.bf16.msrb.mxu2 %v3104_v22  ;;  %1026 = vst [vmem:[%s4159_s18 + $0x8] sm:$0x1f] %v1022_v39  ;;  %v3328_v50 = vor.u32 %v3575_v6, %v3325_v11  ;;  %v3315_v22 = vld [vmem:[#allocation9 + $0x4b0] sm:$0xf]  ;;  %v1041_v39 = vpack.c.bf16 %v1036_v63, %v1035_v33  ;;  %v3588_v63 = vld [vmem:[#allocation11 + $0x28] sm:$0xff] }
 0x284   : > { %2055 = vmatpush.bf16.msrb.mxu3 %v3168_v12  ;;  %v3317_v12 = vld [vmem:[#allocation9 + $0x4b8] sm:$0xf0]  ;;  %v3316_v15 = vor.u32 %v3574_v51, %v3315_v22  ;;  %v1042_v51 = vld [vmem:[%s4478_s4] sm:$0x3]  ;;  %v3585_v24 = vld [vmem:[#allocation11 + $0x10] sm:$0xff] }
 0x285   : > { %2017 = vmatmul.bf16.vlgmr.msrb.gmra.mxu0 %v1845_v34  ;;  %v2101_v61 = vperm.slane %v1041_v39, 0  ;;  %v2102_v0 = vperm.slane %v1041_v39, 4 }
 0x286   : > { %2265 = vmatpush.bf16.msra.mxu0 %v3284_v53  ;;  %2043 = vmatmul.bf16.vlgmr.msrb.gmra.mxu2 %v1845_v34  ;;  %v3320_v53 = vor.u32 %v3573_v45, %v3317_v12  ;;  %v3248_v34 = vor.u32 %v3555_v55, %v3245_v29 }
 0x287   : > { %2278 = vmatpush.bf16.msra.mxu1 %v3348_v28  ;;  %2291 = vmatpush.bf16.msra.mxu2 %v3288_v8  ;;  %v3307_v28 = vld [vmem:[#allocation9 + $0x4a0] sm:$0xf]  ;;  %v3571_v8 = vld [vmem:[#allocation9 + $0x4a4] sm:$0xf] }
 0x288   : > { %2304 = vmatpush.bf16.msra.mxu3 %v3352_v20  ;;  %2030 = vmatmul.bf16.vlgmr.msrb.gmra.mxu1 %v1846_v27  ;;  %v3309_v20 = vld [vmem:[#allocation9 + $0x4a8] sm:$0xf0]  ;;  %v3308_v21 = vor.u32 %v3572_v19, %v3307_v28 }
 0x289   : > { %2056 = vmatmul.bf16.vlgmr.msrb.gmra.mxu3 %v1846_v27  ;;  %v3312_v27 = vor.u32 %v3571_v8, %v3309_v20 }
 0x28a   : > { %2266 = vmatpush.bf16.msra.mxu0 %v3276_v18  ;;  %v3553_v18 = vld [vmem:[#allocation9 + $0x414] sm:$0xf] }
 0x28b   : > { %2279 = vmatpush.bf16.msra.mxu1 %v3340_v16  ;;  %2292 = vmatpush.bf16.msra.mxu2 %v3280_v4  ;;  %v3236_v16 = vor.u32 %v3554_v26, %v3235_v46  ;;  %v3552_v4 = vld [vmem:[#allocation9 + $0x404] sm:$0xf0] }
 0x28c   : > { %2305 = vmatpush.bf16.msra.mxu3 %v3344_v5  ;;  %v3240_v5 = vor.u32 %v3553_v18, %v3237_v35  ;;  %v3228_v17 = vor.u32 %v3552_v4, %v3227_v3  ;;  %v3589_v18 = vld [vmem:[#allocation11 + $0x30] sm:$0xff]  ;;  %v3595_v3 = vld [vmem:[#allocation11 + $0x60] sm:$0xff]  ;;  %v3586_v4 = vld [vmem:[#allocation11 + $0x18] sm:$0xff] }
 0x28d   : > { %v3597_v35 = vld [vmem:[#allocation11 + $0x70] sm:$0xff] }
 0x28e   : > { %2267 = vmatpush.bf16.msra.mxu0 %v3268_v60  ;;  %v3232_v60 = vor.u32 %v3551_v38, %v3229_v47  ;;  %v3593_v38 = vld [vmem:[#allocation11 + $0x50] sm:$0xff] }
 0x28f   : > { %2280 = vmatpush.bf16.msra.mxu1 %v3332_v54  ;;  %2293 = vmatpush.bf16.msra.mxu2 %v3272_v1  ;;  %v3296_v54 = vor.u32 %v3567_v57, %v3293_v41 }
 0x290   : > { %2306 = vmatpush.bf16.msra.mxu3 %v3336_v42 }
 0x292   : > { %2268 = vmatpush.bf16.msra.mxu0 %v3260_v40 }
 0x293   : > { %2281 = vmatpush.bf16.msra.mxu1 %v3324_v56  ;;  %2294 = vmatpush.bf16.msra.mxu2 %v3264_v14 }
 0x294   : > { %2307 = vmatpush.bf16.msra.mxu3 %v3328_v50 }
 0x296   : > { %2269 = vmatpush.bf16.msra.mxu0 %v3252_v31 }
 0x297   : > { %2282 = vmatpush.bf16.msra.mxu1 %v3316_v15  ;;  %2295 = vmatpush.bf16.msra.mxu2 %v3256_v52 }
 0x298   : > { %2308 = vmatpush.bf16.msra.mxu3 %v3320_v53 }
 0x29a   : > { %2270 = vmatpush.bf16.msra.mxu0 %v3244_v9 }
 0x29b   : > { %2283 = vmatpush.bf16.msra.mxu1 %v3308_v21  ;;  %2296 = vmatpush.bf16.msra.mxu2 %v3248_v34 }
 0x29c   : > { %2309 = vmatpush.bf16.msra.mxu3 %v3312_v27  ;;  %v3590_v27 = vld [vmem:[#allocation11 + $0x38] sm:$0xff] }
 0x29e   : > { %2271 = vmatpush.bf16.msra.mxu0 %v3236_v16  ;;  %v3596_v16 = vld [vmem:[#allocation11 + $0x68] sm:$0xff] }
 0x29f   : > { %2284 = vmatpush.bf16.msra.mxu1 %v3300_v2  ;;  %2297 = vmatpush.bf16.msra.mxu2 %v3240_v5  ;;  %v3587_v2 = vld [vmem:[#allocation11 + $0x20] sm:$0xff]  ;;  %v3594_v5 = vld [vmem:[#allocation11 + $0x58] sm:$0xff] }
 0x2a0   : > { %2310 = vmatpush.bf16.msra.mxu3 %v3304_v36 }
 0x2a2   : > { %2272 = vmatpush.bf16.msra.mxu0 %v3228_v17  ;;  %v3584_v17 = vld [vmem:[#allocation11 + $0x8] sm:$0xff] }
 0x2a3   : > { %2285 = vmatpush.bf16.msra.mxu1 %v3292_v37  ;;  %2298 = vmatpush.bf16.msra.mxu2 %v3232_v60  ;;  %v3592_v37 = vld [vmem:[#allocation11 + $0x48] sm:$0xff]  ;;  %v3583_v60 = vld [vmem:[#allocation11] sm:$0xff] }
 0x2a4   : > { %2311 = vmatpush.bf16.msra.mxu3 %v3296_v54  ;;  %v3591_v54 = vld [vmem:[#allocation11 + $0x40] sm:$0xff] }
 0x2a5   : > { %2273 = vmatmul.bf16.vlgmr.msra.gmra.mxu0 %v2101_v61 }
 0x2a6   : > { %2286 = vmatmul.bf16.vlgmr.msra.gmra.mxu1 %v2102_v0  ;;  %2299 = vmatmul.bf16.vlgmr.msra.gmra.mxu2 %v2101_v61 }
 0x2a7   : > { %2312 = vmatmul.bf16.vlgmr.msra.gmra.mxu3 %v2102_v0  ;;  %2460 = vmatpush.bf16.msrb.mxu0 %v3590_v27 }
 0x2a8   : > { %2473 = vmatpush.bf16.msrb.mxu1 %v3598_v25 }
 0x2ab   : > { %2461 = vmatpush.bf16.msrb.mxu0 %v3589_v18 }
 0x2ac   : > { %2474 = vmatpush.bf16.msrb.mxu1 %v3597_v35 }
 0x2af   : > { %2462 = vmatpush.bf16.msrb.mxu0 %v3588_v63 }
 0x2b0   : > { %2475 = vmatpush.bf16.msrb.mxu1 %v3596_v16 }
 0x2b2   : > { %v1249_v1 = vpop.f32.mrf.mxu0 }
 0x2b3   : > { %v1262_v42 = vpop.f32.mrf.mxu1  ;;  %2463 = vmatpush.bf16.msrb.mxu0 %v3587_v2 }
 0x2b4   : > { %v1263_v44 = vadd.f32 %v1262_v42, %v1249_v1  ;;  %2476 = vmatpush.bf16.msrb.mxu1 %v3595_v3 }
 0x2b7   : > { %v1275_v10 = vpop.f32.mrf.mxu2  ;;  %2464 = vmatpush.bf16.msrb.mxu0 %v3586_v4 }
 0x2b8   : > { %v1288_v7 = vpop.f32.mrf.mxu3  ;;  %2477 = vmatpush.bf16.msrb.mxu1 %v3594_v5 }
 0x2b9   : > { %v1289_v6 = vadd.f32 %v1288_v7, %v1275_v10 }
 0x2ba   : > { %v1251_v56 = vpop.f32.mrf.mxu0 }
 0x2bb   : > { %v1294_v11 = vrot.slane %v1289_v6, 7  ;;  %v1264_v48 = vpop.f32.mrf.mxu1  ;;  %2465 = vmatpush.bf16.msrb.mxu0 %v3585_v24 }
 0x2bc   : > { %2478 = vmatpush.bf16.msrb.mxu1 %v3593_v38 }
 0x2bd   : > { %v1296_v40 = vsel %vm1295_vm6, %v1263_v44, %v1294_v11 }
 0x2be   : > { %v1298_v31 = vadd.f32 %v1296_v40, %v1042_v51 }
 0x2bf   : > { %v1277_v13 = vpop.f32.mrf.mxu2  ;;  %2466 = vmatpush.bf16.msrb.mxu0 %v3584_v17 }
 0x2c0   : > { %v1290_v14 = vpop.f32.mrf.mxu3  ;;  %2479 = vmatpush.bf16.msrb.mxu1 %v3592_v37 }
 0x2c2   : > { %v1506_v50 = vpop.f32.mrf.mxu0 }
 0x2c3   : > { %2467 = vmatpush.bf16.msrb.mxu0 %v3583_v60 }
 0x2c4   : > { %2480 = vmatpush.bf16.msrb.mxu1 %v3591_v54 }
 0x2c5   : > { %v1519_v22 = vpop.f32.mrf.mxu1 }
 0x2c6   : > { %v1520_v30 = vadd.f32 %v1519_v22, %v1506_v50 }
 0x2c9   : > { %v1532_v23 = vpop.f32.mrf.mxu2 }
 0x2ca   : > { %v1508_v52 = vpop.f32.mrf.mxu0 }
 0x2cb   : > { %v2363_v52 = vld [vmem:[%s4480_s6] sm:$0x1] }
 0x2cc   : > { %v1545_v45 = vpop.f32.mrf.mxu3 }
 0x2cd   : > { %v1546_v12 = vadd.f32 %v1545_v45, %v1532_v23  ;;  %v1521_v53 = vpop.f32.mrf.mxu1 }
 0x2cf   : > { %v1551_v15 = vrot.slane %v1546_v12, 7 }
 0x2d1   : > { %v1552_v43 = vsel %vm1295_vm6, %v1520_v30, %v1551_v15  ;;  %v1534_v28 = vpop.f32.mrf.mxu2 }
 0x2d2   : > { %v1554_v49 = vadd.f32 %v1552_v43, %v1298_v31 }
 0x2d4   : > { %v1547_v19 = vpop.f32.mrf.mxu3 }
 0x2e2   : > { %v1762_v55 = vpop.f32.mrf.mxu0 }
 0x2e3   : > { %v1775_v29 = vpop.f32.mrf.mxu1 }
 0x2e4   : > { %v1776_v8 = vadd.f32 %v1775_v29, %v1762_v55 }
 0x2ea   : > { %v1764_v46 = vpop.f32.mrf.mxu0 }
 0x2eb   : > { %v1788_v20 = vpop.f32.mrf.mxu2  ;;  %v1777_v26 = vpop.f32.mrf.mxu1 }
 0x2ec   : > { %v1801_v9 = vpop.f32.mrf.mxu3 }
 0x2ed   : > { %v1802_v21 = vadd.f32 %v1801_v9, %v1788_v20 }
 0x2ef   : > { %v1807_v34 = vrot.slane %v1802_v21, 7 }
 0x2f1   : > { %v1808_v59 = vsel %vm1295_vm6, %v1776_v8, %v1807_v34 }
 0x2f2   : > { %v1810_v32 = vadd.f32 %v1808_v59, %v1554_v49 }
 0x2f3   : > { %v1790_v62 = vpop.f32.mrf.mxu2 }
 0x2f4   : > { %v1803_v33 = vpop.f32.mrf.mxu3 }
 0x302   : > { %v2018_v36 = vpop.f32.mrf.mxu0 }
 0x305   : > { %v2031_v58 = vpop.f32.mrf.mxu1 }
 0x306   : > { %v2032_v7 = vadd.f32 %v2031_v58, %v2018_v36 }
 0x309   : > { %v2044_v47 = vpop.f32.mrf.mxu2 }
 0x30a   : > { %v2020_v41 = vpop.f32.mrf.mxu0 }
 0x30c   : > { %v2057_v57 = vpop.f32.mrf.mxu3 }
 0x30d   : > { %v2033_v39 = vpop.f32.mrf.mxu1  ;;  %v2058_v1 = vadd.f32 %v2057_v57, %v2044_v47 }
 0x30f   : > { %v2063_v10 = vrot.slane %v2058_v1, 7 }
 0x311   : > { %v2046_v61 = vpop.f32.mrf.mxu2  ;;  %v2064_v40 = vsel %vm1295_vm6, %v2032_v7, %v2063_v10 }
 0x312   : > { %v2066_v22 = vadd.f32 %v2064_v40, %v1810_v32 }
 0x314   : > { %v2059_v0 = vpop.f32.mrf.mxu3 }
 0x322   : > { %v2274_v42 = vpop.f32.mrf.mxu0 }
 0x323   : > { %v2287_v44 = vpop.f32.mrf.mxu1 }
 0x324   : > { %v2288_v56 = vadd.f32 %v2287_v44, %v2274_v42 }
 0x329   : > { %v2300_v6 = vpop.f32.mrf.mxu2 }
 0x32a   : > { %v2313_v11 = vpop.f32.mrf.mxu3  ;;  %v2276_v13 = vpop.f32.mrf.mxu0 }
 0x32b   : > { %v2314_v48 = vadd.f32 %v2313_v11, %v2300_v6  ;;  %v2289_v14 = vpop.f32.mrf.mxu1 }
 0x32d   : > { %v2319_v50 = vrot.slane %v2314_v48, 7 }
 0x32f   : > { %v2320_v51 = vsel %vm1295_vm6, %v2288_v56, %v2319_v50 }
 0x330   : > { %v2322_v30 = vadd.f32 %v2320_v51, %v2066_v22 }
 0x331   : > { %v2302_v45 = vpop.f32.mrf.mxu2 }
 0x332   : > { %v2323_v23 = vmax.f32 %v2322_v30, 0.0  ;;  %v2315_v12 = vpop.f32.mrf.mxu3 }
 0x334   : > { %v2325_v31 = vperm.slane %v2323_v23, 0  ;;  %v2326_v15 = vperm.slane %v2323_v23, 1 }
 0x336   : > { %v2329_v43 = vpack.c.bf16 %v2325_v31, %v2325_v31  ;;  %v2330_v49 = vpack.c.bf16 %v2326_v15, %v2326_v15 }
 0x338   : > { %2468 = vmatmul.bf16.vlgmr.msrb.gmra.mxu0 %v2329_v43  ;;  %2481 = vmatmul.bf16.vlgmr.msrb.gmra.mxu1 %v2330_v49 }
 0x3b5   : > { %v2469_v53 = vpop.f32.mrf.mxu0  ;;  %v2482_v28 = vpop.f32.mrf.mxu1 }
 0x3b6   : > { %v2470_v19 = vadd.f32 %v2469_v53, %v2363_v52 }
 0x3b8   : > { %v2483_v55 = vadd.f32 %v2482_v28, %v2470_v19 }
 0x3ba   : > { %2486 = vst [vmem:[%s412_s12] sm:$0x1] %v2483_v55 }
 0x3bb   : > { %3897 = shalt.err (!%p3894_p4)
}
 0x3bc   : > { %3619 = dma.vmem_to_hbm [thread:$0]  (%p4118_p0), %s2507_s11, 16, %s2509_s13, %s2493_s20  }
 0x3bd   : > { %v2471_v29 = vpop.f32.mrf.mxu0  ;;  %v2484_v8 = vpop.f32.mrf.mxu1 }
 0x3be PF: > { %s2528_s21 = sand.u32 1, %s3944_s27   ;;  %p3639_p7 = pnand %p2666_p6, %p4125_p5 }
 0x3bf   : > { %s2529_s12 = scalar_lea.sflag [#allocation5], %s2528_s21 }
 0x3c0   : > { %p3640_p11 = pneg %p3639_p7 }
 0x3c2   : > { %3939 = dma.done.wait (%p3640_p11), %s2529_s12, 16  }
 0x3c3   : > { %3941 = vsyncadd (%p3640_p11), %s2529_s12, 4294967280  ;;  %s27_s10 = sadd.s32 1, %s3964_s10   ;;  %s4497_s27 = smov %s3948_s28 }
 0x3c4   : > { %p24_p3 = scmp.ge.s32.totalorder %s27_s10, 4   ;;  %s4498_s28 = smov %s3952_s29 }
 0x3c5   : > { %s4499_s29 = smov %s4123_s23  ;;  %s4500_s30 = smov %s3960_s9 }
 0x3c6   : > { %s4501_s9 = smov %s4503_s14  ;;  %26 = sbr.rel (!%p24_p3) target bundleno = 12 (0xc), region = 154 }
 0x3cb   :  { %2534 = vsyncpa [#allocation4], 1 }
 0x3cc   :  { %2536 = vsyncpa [#allocation4 + $0x1], 1 }
 0x3cd   :  { %2537 = vsyncpa [#allocation7], 1 }
 0x3ce   :  { %2538 = vsyncpa [#allocation10], 1 }
 0x3cf   :  { %2539 = vsyncpa [#allocation5], 1 }
 0x3d0   :  { %2541 = vsyncpa [#allocation5 + $0x1], 1 }

</bundles_post_ra>
